<compile_context>
chip_gen: v7x
topology: tpu7x:2x2x1
jax: 0.10.0
libtpu: 0.0.40
codegen_flags: <defaults>
</compile_context>

<pallas_src>
import jax
import jax.numpy as jnp
from jax.experimental import pallas as pl
from jax.experimental.pallas import tpu as pltpu

IN_FEATURES = 2048      # inception_v3 pooled feature size
FC_OUT = 1000           # inception_v3.fc output (logits)
EMBEDDING_SIZE = 64     # kargs['embedding_size']
E_PAD = 128             # embedding dim padded to a full lane width


def _siamese_fused_kernel(x1_ref, x2_ref, w_ref, b_ref, o1_ref, o2_ref):
    """out_k = x_k @ W_fused + b_fused for both branches (shared weights).

    The fused weight (2048 x 128, ~1 MiB f32) is loaded into VMEM once and
    reused for both branches; matmuls run on the MXU with f32 accumulation.
    """
    w = w_ref[...]                                             # (2048, E_PAD)
    b = b_ref[...]                                             # (1, E_PAD)
    o1 = jnp.dot(x1_ref[...], w, preferred_element_type=jnp.float32) + b
    o2 = jnp.dot(x2_ref[...], w, preferred_element_type=jnp.float32) + b
    o1_ref[...] = o1.astype(o1_ref.dtype)
    o2_ref[...] = o2.astype(o2_ref.dtype)


def fuse_head_params(w1, b1, w2, b2):
    """One-time param prep: collapse the two bias-only linears into one.

    (x @ W1 + b1) @ W2 + b2  ==  x @ (W1 @ W2) + (b1 @ W2 + b2)
    Also zero-pads the embedding dim to 128 lanes for unmasked output stores.
    """
    w_fused = w1 @ w2                      # (2048, E)
    b_fused = b1 @ w2 + b2                 # (1, E)
    e = w2.shape[1]
    w_fused = jnp.pad(w_fused, ((0, 0), (0, E_PAD - e)))
    b_fused = jnp.pad(b_fused, ((0, 0), (0, E_PAD - e)))
    return w_fused, b_fused


def siamese_forward(input1, input2, fused_params):
    """Siamese forward: shared fused head applied to both branches in ONE call."""
    w_fused, b_fused = fused_params
    B = input1.shape[0]

    out1_p, out2_p = pl.pallas_call(
        _siamese_fused_kernel,
        out_shape=(
            jax.ShapeDtypeStruct((B, E_PAD), jnp.float32),
            jax.ShapeDtypeStruct((B, E_PAD), jnp.float32),
        ),
        grid_spec=pltpu.PrefetchScalarGridSpec(
            num_scalar_prefetch=0,
            grid=(1,),
            in_specs=[
                pl.BlockSpec((B, IN_FEATURES), lambda i: (0, 0)),       # x1
                pl.BlockSpec((B, IN_FEATURES), lambda i: (0, 0)),       # x2
                pl.BlockSpec((IN_FEATURES, E_PAD), lambda i: (0, 0)),   # W_fused
                pl.BlockSpec((1, E_PAD), lambda i: (0, 0)),             # b_fused
            ],
            out_specs=[
                pl.BlockSpec((B, E_PAD), lambda i: (0, 0)),
                pl.BlockSpec((B, E_PAD), lambda i: (0, 0)),
            ],
        ),
        compiler_params=pltpu.CompilerParams(
            dimension_semantics=("arbitrary",),
            # Working set (double-buffered weight + activations) is ~2.5 MiB;
            # request a modest limit instead of the full VMEM (v7x has 64 MiB).
            vmem_limit_bytes=8 << 20,
        ),
    )(input1, input2, w_fused, b_fused)

    # Strip the lane padding outside the kernel.
    return out1_p[:, :EMBEDDING_SIZE], out2_p[:, :EMBEDDING_SIZE]


def init_params(key):
    k1, k2, k3, k4 = jax.random.split(key, 4)
    # Deterministic synthetic init (mirrors nn.Linear shapes; stored as [in, out]).
    w1 = jax.random.normal(k1, (IN_FEATURES, FC_OUT), jnp.float32) * 0.02
    b1 = jax.random.normal(k2, (1, FC_OUT), jnp.float32) * 0.01
    w2 = jax.random.normal(k3, (FC_OUT, EMBEDDING_SIZE), jnp.float32) * 0.02
    b2 = jax.random.normal(k4, (1, EMBEDDING_SIZE), jnp.float32) * 0.01
    return w1, b1, w2, b2


if __name__ == "__main__":
    key = jax.random.PRNGKey(0)
    kp, kx1, kx2 = jax.random.split(key, 3)

    B = 2
    w1, b1, w2, b2 = init_params(kp)
    fused_params = fuse_head_params(w1, b1, w2, b2)   # one-time param prep

    # Branch inputs = inception_v3 pooled features (2048-d) for each image.
    input1 = jax.random.normal(kx1, (B, IN_FEATURES), jnp.float32)
    input2 = jax.random.normal(kx2, (B, IN_FEATURES), jnp.float32)

    out1, out2 = siamese_forward(input1, input2, fused_params)
    jax.block_until_ready((out1, out2))

    # Reference check in plain JAX against the original two-linear head.
    ref1 = (input1 @ w1 + b1) @ w2 + b2
    ref2 = (input2 @ w1 + b1) @ w2 + b2
    assert out1.shape == (B, EMBEDDING_SIZE) and out2.shape == (B, EMBEDDING_SIZE)
    assert jnp.allclose(out1, ref1, atol=1e-3, rtol=1e-3)
    assert jnp.allclose(out2, ref2, atol=1e-3, rtol=1e-3)

    print("KERNEL_OK")
</pallas_src>

<mosaic_0001>
module attributes {stable_mosaic.version = 11 : i64} {
  func.func @_siamese_fused_kernel(%arg0: i32, %arg1: memref<2x2048xf32, #tpu.memory_space<vmem>>, %arg2: memref<2x2048xf32, #tpu.memory_space<vmem>>, %arg3: memref<2048x128xf32, #tpu.memory_space<vmem>>, %arg4: memref<1x128xf32, #tpu.memory_space<vmem>>, %arg5: memref<2x128xf32, #tpu.memory_space<vmem>>, %arg6: memref<2x128xf32, #tpu.memory_space<vmem>>) attributes {dimension_semantics = [#tpu.dimension_semantics<arbitrary>], iteration_bounds = array<i64: 1>, scalar_prefetch = 0 : i64, scratch_operands = 0 : i64, tpu.core_type = #tpu.core_type<tc>, window_params = [{pipeline_mode = #tpu.pipeline_mode<synchronous>, transform_indices = @transform_0, window_bounds = array<i64: 2, 2048>}, {pipeline_mode = #tpu.pipeline_mode<synchronous>, transform_indices = @transform_1, window_bounds = array<i64: 2, 2048>}, {pipeline_mode = #tpu.pipeline_mode<synchronous>, transform_indices = @transform_2, window_bounds = array<i64: 2048, 128>}, {pipeline_mode = #tpu.pipeline_mode<synchronous>, transform_indices = @transform_3, window_bounds = array<i64: 1, 128>}, {pipeline_mode = #tpu.pipeline_mode<synchronous>, transform_indices = @transform_4, window_bounds = array<i64: 2, 128>}, {pipeline_mode = #tpu.pipeline_mode<synchronous>, transform_indices = @transform_5, window_bounds = array<i64: 2, 128>}]} {
    %c0 = arith.constant 0 : index
    %c0_0 = arith.constant 0 : index
    %0 = vector.load %arg3[%c0, %c0_0] : memref<2048x128xf32, #tpu.memory_space<vmem>>, vector<2048x128xf32>
    %c0_1 = arith.constant 0 : index
    %c0_2 = arith.constant 0 : index
    %1 = vector.load %arg4[%c0_1, %c0_2] : memref<1x128xf32, #tpu.memory_space<vmem>>, vector<1x128xf32>
    %c0_3 = arith.constant 0 : index
    %c0_4 = arith.constant 0 : index
    %2 = vector.load %arg1[%c0_3, %c0_4] : memref<2x2048xf32, #tpu.memory_space<vmem>>, vector<2x2048xf32>
    %cst = arith.constant dense<0.000000e+00> : vector<2x128xf32>
    %3 = tpu.matmul %2, %0, %cst {dimension_numbers = #tpu.dot_dimension_numbers<[1], [0], [0], [1], [0, 0, 1, 1], [], []>} : vector<2x2048xf32>, vector<2048x128xf32>, vector<2x128xf32> -> vector<2x128xf32>
    %4 = vector.broadcast %1 : vector<1x128xf32> to vector<2x128xf32>
    %5 = arith.addf %3, %4 : vector<2x128xf32>
    %c0_5 = arith.constant 0 : index
    %c0_6 = arith.constant 0 : index
    %6 = vector.load %arg2[%c0_5, %c0_6] : memref<2x2048xf32, #tpu.memory_space<vmem>>, vector<2x2048xf32>
    %cst_7 = arith.constant dense<0.000000e+00> : vector<2x128xf32>
    %7 = tpu.matmul %6, %0, %cst_7 {dimension_numbers = #tpu.dot_dimension_numbers<[1], [0], [0], [1], [0, 0, 1, 1], [], []>} : vector<2x2048xf32>, vector<2048x128xf32>, vector<2x128xf32> -> vector<2x128xf32>
    %8 = vector.broadcast %1 : vector<1x128xf32> to vector<2x128xf32>
    %9 = arith.addf %7, %8 : vector<2x128xf32>
    %c0_8 = arith.constant 0 : index
    %c0_9 = arith.constant 0 : index
    %10 = vector.load %arg5[%c0_8, %c0_9] : memref<2x128xf32, #tpu.memory_space<vmem>>, vector<2x128xf32>
    tpu.vector_store %arg5[%c0_8, %c0_9], %5 {strides = array<i32>} : memref<2x128xf32, #tpu.memory_space<vmem>>, vector<2x128xf32>,
    %c0_10 = arith.constant 0 : index
    %c0_11 = arith.constant 0 : index
    %11 = vector.load %arg6[%c0_10, %c0_11] : memref<2x128xf32, #tpu.memory_space<vmem>>, vector<2x128xf32>
    tpu.vector_store %arg6[%c0_10, %c0_11], %9 {strides = array<i32>} : memref<2x128xf32, #tpu.memory_space<vmem>>, vector<2x128xf32>,
    return
  }
  func.func @transform_0(%arg0: i32) -> (i32, i32) {
    %c0_i32 = arith.constant 0 : i32
    %c0_i32_0 = arith.constant 0 : i32
    %c0_i32_1 = arith.constant 0 : i32
    return %c0_i32, %c0_i32_0 : i32, i32
  }
  func.func @transform_1(%arg0: i32) -> (i32, i32) {
    %c0_i32 = arith.constant 0 : i32
    %c0_i32_0 = arith.constant 0 : i32
    %c0_i32_1 = arith.constant 0 : i32
    return %c0_i32, %c0_i32_0 : i32, i32
  }
  func.func @transform_2(%arg0: i32) -> (i32, i32) {
    %c0_i32 = arith.constant 0 : i32
    %c0_i32_0 = arith.constant 0 : i32
    %c0_i32_1 = arith.constant 0 : i32
    return %c0_i32, %c0_i32_0 : i32, i32
  }
  func.func @transform_3(%arg0: i32) -> (i32, i32) {
    %c0_i32 = arith.constant 0 : i32
    %c0_i32_0 = arith.constant 0 : i32
    %c0_i32_1 = arith.constant 0 : i32
    return %c0_i32, %c0_i32_0 : i32, i32
  }
  func.func @transform_4(%arg0: i32) -> (i32, i32) {
    %c0_i32 = arith.constant 0 : i32
    %c0_i32_0 = arith.constant 0 : i32
    %c0_i32_1 = arith.constant 0 : i32
    return %c0_i32, %c0_i32_0 : i32, i32
  }
  func.func @transform_5(%arg0: i32) -> (i32, i32) {
    %c0_i32 = arith.constant 0 : i32
    %c0_i32_0 = arith.constant 0 : i32
    %c0_i32_1 = arith.constant 0 : i32
    return %c0_i32, %c0_i32_0 : i32, i32
  }
}

</mosaic_0001>

<bundles_post_ra>
// kernel: tpu_custom_call.1
= control target key start
LH: loop header
LB: loop body
LE: loop exit
PB: predicated region body
PF: predicated region fallthrough
CT: control target
= control target key end

     0   :  { %11 = vsyncpa [#allocation3], 0  ;;  %s3529_s0 = inlined_call_operand.hbm [shape: f32[2,2048], index: 0, kind: input, shape index: {}]   ;;  %s3530_s1 = inlined_call_operand.hbm [shape: f32[2,2048], index: 1, kind: input, shape index: {}]   ;;  %s3531_s2 = inlined_call_operand.hbm [shape: f32[2048,128], index: 2, kind: input, shape index: {}]   ;;  %s3532_s3 = inlined_call_operand.vmem [shape: f32[1,128], index: 3, kind: input, shape index: {}]   ;;  %s3533_s4 = inlined_call_operand.hbm [shape: f32[2,128], index: 4, kind: output, shape index: {0}]   ;;  %s3534_s5 = inlined_call_operand.hbm [shape: f32[2,128], index: 5, kind: output, shape index: {1}]  }
   0x1   :  { %12 = vsyncpa [#allocation6], 0 }
   0x2   :  { %13 = vsyncpa [#allocation4], 0 }
   0x3   :  { %14 = vsyncpa [#allocation10], 0  ;;  %s2864_s18 = smov [#allocation5]   ;;  %s2865_s20 = smov [#allocation2]  }
   0x4   :  { %s31_s19 = sshll.u32 %s2864_s18, 4  ;;  %s21_s21 = sshll.u32 %s2865_s20, 4  ;;  %s32_s19 = int_to_ptr.vmem [resolvable:$true] %s31_s19  ;;  %s22_s21 = int_to_ptr.vmem [resolvable:$true] %s21_s21 }
   0x5   :  { %s2746_s24 = scalar_lea.hbm %s3530_s1, 512 }
   0x6   :  { %p2747_p0 = scmp.ne.s32.totalorder %s3530_s1, %s2746_s24  ;;  %p2750_p1 = scmp.lt.u32.totalorder %s2746_s24, %s3530_s1 }
   0x8   :  { %p2752_p2 = pnand %p2750_p1, %p2747_p0 }
   0xa   :  { %2755 = shalt.err (!%p2752_p2)
}
   0xb   :  { %s2756_s29 = scalar_lea.vmem %s32_s19, 512  ;;  %p2761_p4 = scmp.lt.s32.totalorder %s32_s19, %s32_s19 }
   0xc   :  { %p2757_p3 = scmp.ne.s32.totalorder %s32_s19, %s2756_s29  ;;  %p2762_p5 = scmp.lt.s32.totalorder %s2756_s29, %s2756_s29 }
   0xe   :  { %p2763_p6 = por %p2762_p5, %p2761_p4 }
  0x10   :  { %p2764_p7 = pnand %p2763_p6, %p2757_p3 }
  0x12   :  { %2767 = shalt.err (!%p2764_p7)
}
  0x13   :  { %34 = dma.hbm_to_vmem [thread:$0]  %s3530_s1, 512, %s32_s19, [#allocation6]  }
  0x14   :  { %s2768_s9 = scalar_lea.hbm %s3529_s0, 512 }
  0x15   :  { %p2769_p8 = scmp.ne.s32.totalorder %s3529_s0, %s2768_s9  ;;  %p2772_p9 = scmp.lt.u32.totalorder %s2768_s9, %s3529_s0 }
  0x17   :  { %p2774_p10 = pnand %p2772_p9, %p2769_p8 }
  0x19   :  { %2777 = shalt.err (!%p2774_p10)
}
  0x1a   :  { %s2778_s14 = scalar_lea.vmem %s22_s21, 512  ;;  %p2783_p12 = scmp.lt.s32.totalorder %s22_s21, %s22_s21 }
  0x1b   :  { %p2779_p11 = scmp.ne.s32.totalorder %s22_s21, %s2778_s14  ;;  %p2784_p13 = scmp.lt.s32.totalorder %s2778_s14, %s2778_s14 }
  0x1d   :  { %p2785_p0 = por %p2784_p13, %p2783_p12 }
  0x1f   :  { %p2786_p1 = pnand %p2785_p0, %p2779_p11 }
  0x21   :  { %2789 = shalt.err (!%p2786_p1)
}
  0x22   :  { %24 = dma.hbm_to_vmem [thread:$0]  %s3529_s0, 512, %s22_s21, [#allocation3]  }
  0x23   :  { %s2866_s16 = smov [#allocation7]   ;;  %s2790_s20 = scalar_lea.hbm %s3531_s2, 32768 }
  0x24   :  { %s40_s17 = sshll.u32 %s2866_s16, 4  ;;  %p2791_p2 = scmp.ne.s32.totalorder %s3531_s2, %s2790_s20  ;;  %s41_s17 = int_to_ptr.vmem [resolvable:$true] %s40_s17 }
  0x25   :  { %p2794_p3 = scmp.lt.u32.totalorder %s2790_s20, %s3531_s2 }
  0x27   :  { %p2796_p4 = pnand %p2794_p3, %p2791_p2 }
  0x29   :  { %2799 = shalt.err (!%p2796_p4)
}
  0x2a   :  { %s2800_s26 = scalar_lea.vmem %s41_s17, 32768  ;;  %p2805_p6 = scmp.lt.s32.totalorder %s41_s17, %s41_s17 }
  0x2b   :  { %p2801_p5 = scmp.ne.s32.totalorder %s41_s17, %s2800_s26  ;;  %p2806_p7 = scmp.lt.s32.totalorder %s2800_s26, %s2800_s26 }
  0x2d   :  { %p2807_p8 = por %p2806_p7, %p2805_p6 }
  0x2f   :  { %p2808_p9 = pnand %p2807_p8, %p2801_p5 }
  0x31   :  { %2811 = shalt.err (!%p2808_p9)
}
  0x32   :  { %s2867_s0 = smov 128   ;;  %s2868_s21 = smov 8  }
  0x33   :  { %46 = dma.hbm_to_vmem [thread:$0]  %s3531_s2, 32768, %s41_s17, [#allocation6], %s2867_s0, %s2867_s0, %s2868_s21  }
  0x34   :  { %2856 = dma.done.wait [#allocation3], 512  }
  0x35   :  { %2857 = vsyncadd [#allocation3], 4294966784 }
  0x36   :  { %2858 = dma.done.wait [#allocation6], 33280  }
  0x37   :  { %2859 = vsyncadd [#allocation6], 4294934016  ;;  %v74_v0 = vld [vmem:[#allocation7 + $0x80] sm:$0xff]  ;;  %v75_v1 = vld [vmem:[#allocation7 + $0x88] sm:$0xff]  ;;  %v2869_v47 = vmov 1983009808   ;;  %v333_v49 = vlaneseq }
  0x38   :  { %v58_v2 = vld [vmem:[#allocation7] sm:$0xff]  ;;  %v2938_v3 = vpack.c.bf16 %v75_v1, %v74_v0  ;;  %v59_v4 = vld [vmem:[#allocation7 + $0x8] sm:$0xff]  ;;  %v76_v11 = vld [vmem:[#allocation7 + $0x90] sm:$0xff]  ;;  %v331_v48 = vunpack.c.l.s4 %v2869_v47 }
  0x39   :  { %v106_v5 = vld [vmem:[#allocation7 + $0x180] sm:$0xff]  ;;  %v107_v6 = vld [vmem:[#allocation7 + $0x188] sm:$0xff]  ;;  %v2940_v7 = vpack.c.bf16 %v59_v4, %v58_v2  ;;  %v77_v13 = vld [vmem:[#allocation7 + $0x98] sm:$0xff]  ;;  %v334_v0 = vshrl.u32 %v333_v49, 7 }
  0x3a   :  { %v2942_v8 = vpack.c.bf16 %v107_v6, %v106_v5  ;;  %v90_v9 = vld [vmem:[#allocation7 + $0x100] sm:$0xff]  ;;  %v91_v10 = vld [vmem:[#allocation7 + $0x108] sm:$0xff]  ;;  %2219 = vmatprep.subr.bf16.mxu0 %v2938_v3  ;;  %v60_v14 = vld [vmem:[#allocation7 + $0x10] sm:$0xff]  ;;  %v2949_v16 = vpack.c.bf16 %v77_v13, %v76_v11  ;;  %v332_v63 = vunpack.c.0.s8 %v331_v48 }
  0x3b   :  { %v2945_v12 = vpack.c.bf16 %v91_v10, %v90_v9  ;;  %v61_v15 = vld [vmem:[#allocation7 + $0x18] sm:$0xff]  ;;  %2221 = vmatpush3.bf16.msra.mxu0 %v2940_v7  ;;  %v108_v18 = vld [vmem:[#allocation7 + $0x190] sm:$0xff]  ;;  %v78_v23 = vld [vmem:[#allocation7 + $0xa0] sm:$0xff] }
  0x3c   :  { %2251 = vmatprep.subr.bf16.mxu1 %v2942_v8  ;;  %v2951_v17 = vpack.c.bf16 %v61_v15, %v60_v14  ;;  %v109_v19 = vld [vmem:[#allocation7 + $0x198] sm:$0xff]  ;;  %v92_v20 = vld [vmem:[#allocation7 + $0x110] sm:$0xff]  ;;  %v79_v24 = vld [vmem:[#allocation7 + $0xa8] sm:$0xff]  ;;  %2223 = vmatprep.subr.bf16.mxu0 %v2949_v16 }
  0x3d   :  { %2253 = vmatpush3.bf16.msra.mxu1 %v2945_v12  ;;  %v2954_v21 = vpack.c.bf16 %v109_v19, %v108_v18  ;;  %v93_v22 = vld [vmem:[#allocation7 + $0x118] sm:$0xff]  ;;  %v2959_v26 = vpack.c.bf16 %v79_v24, %v78_v23  ;;  %v62_v27 = vld [vmem:[#allocation7 + $0x20] sm:$0xff]  ;;  %v63_v28 = vld [vmem:[#allocation7 + $0x28] sm:$0xff]  ;;  %v3000_v19 = vsub.s32 %v332_v63, %v334_v0 }
  0x3e   :  { %v2957_v25 = vpack.c.bf16 %v93_v22, %v92_v20  ;;  %v110_v29 = vld [vmem:[#allocation7 + $0x1a0] sm:$0xff]  ;;  %v111_v30 = vld [vmem:[#allocation7 + $0x1a8] sm:$0xff]  ;;  %v2963_v33 = vpack.c.bf16 %v63_v28, %v62_v27  ;;  %v80_v35 = vld [vmem:[#allocation7 + $0xb0] sm:$0xff] }
  0x3f   :  { %2255 = vmatprep.subr.bf16.mxu1 %v2954_v21  ;;  %v94_v31 = vld [vmem:[#allocation7 + $0x120] sm:$0xff]  ;;  %v95_v32 = vld [vmem:[#allocation7 + $0x128] sm:$0xff]  ;;  %2225 = vmatpush3.bf16.msra.mxu0 %v2951_v17  ;;  %v2965_v34 = vpack.c.bf16 %v111_v30, %v110_v29  ;;  %v81_v36 = vld [vmem:[#allocation7 + $0xb8] sm:$0xff] }
  0x40   :  { %v64_v37 = vld [vmem:[#allocation7 + $0x30] sm:$0xff]  ;;  %2227 = vmatprep.subr.bf16.mxu0 %v2959_v26  ;;  %v2969_v38 = vpack.c.bf16 %v95_v32, %v94_v31  ;;  %v2971_v39 = vpack.c.bf16 %v81_v36, %v80_v35  ;;  %v65_v40 = vld [vmem:[#allocation7 + $0x38] sm:$0xff]  ;;  %v82_v46 = vld [vmem:[#allocation7 + $0xc0] sm:$0xff] }
  0x41   :  { %2257 = vmatpush3.bf16.msra.mxu1 %v2957_v25  ;;  %v112_v41 = vld [vmem:[#allocation7 + $0x1b0] sm:$0xff]  ;;  %v113_v42 = vld [vmem:[#allocation7 + $0x1b8] sm:$0xff]  ;;  %v83_v50 = vld [vmem:[#allocation7 + $0xc8] sm:$0xff]  ;;  %v2977_v51 = vpack.c.bf16 %v65_v40, %v64_v37 }
  0x42   :  { %2259 = vmatprep.subr.bf16.mxu1 %v2965_v34  ;;  %v2974_v43 = vpack.c.bf16 %v113_v42, %v112_v41  ;;  %v96_v44 = vld [vmem:[#allocation7 + $0x130] sm:$0xff]  ;;  %v97_v45 = vld [vmem:[#allocation7 + $0x138] sm:$0xff]  ;;  %v114_v52 = vld [vmem:[#allocation7 + $0x1c0] sm:$0xff]  ;;  %v2983_v55 = vpack.c.bf16 %v83_v50, %v82_v46 }
  0x43   :  { %2229 = vmatpush3.bf16.msra.mxu0 %v2963_v33  ;;  %v115_v53 = vld [vmem:[#allocation7 + $0x1c8] sm:$0xff]  ;;  %v2981_v54 = vpack.c.bf16 %v97_v45, %v96_v44  ;;  %v66_v56 = vld [vmem:[#allocation7 + $0x40] sm:$0xff]  ;;  %v84_v61 = vld [vmem:[#allocation7 + $0xd0] sm:$0xff] }
  0x44   :  { %2231 = vmatprep.subr.bf16.mxu0 %v2971_v39  ;;  %v67_v57 = vld [vmem:[#allocation7 + $0x48] sm:$0xff]  ;;  %v98_v58 = vld [vmem:[#allocation7 + $0x140] sm:$0xff]  ;;  %v2986_v59 = vpack.c.bf16 %v115_v53, %v114_v52  ;;  %v85_v62 = vld [vmem:[#allocation7 + $0xd8] sm:$0xff] }
  0x45   :  { %2261 = vmatpush3.bf16.msra.mxu1 %v2969_v38  ;;  %v99_v60 = vld [vmem:[#allocation7 + $0x148] sm:$0xff]  ;;  %v116_v1 = vld [vmem:[#allocation7 + $0x1d0] sm:$0xff]  ;;  %v117_v2 = vld [vmem:[#allocation7 + $0x1d8] sm:$0xff]  ;;  %v2989_v4 = vpack.c.bf16 %v67_v57, %v66_v56  ;;  %v2995_v6 = vpack.c.bf16 %v85_v62, %v84_v61 }
  0x46   :  { %2263 = vmatprep.subr.bf16.mxu1 %v2974_v43  ;;  %v2993_v5 = vpack.c.bf16 %v99_v60, %v98_v58  ;;  %v68_v9 = vld [vmem:[#allocation7 + $0x50] sm:$0xff]  ;;  %v69_v10 = vld [vmem:[#allocation7 + $0x58] sm:$0xff]  ;;  %v2998_v13 = vpack.c.bf16 %v117_v2, %v116_v1  ;;  %v86_v15 = vld [vmem:[#allocation7 + $0xe0] sm:$0xff] }
  0x47   :  { %2233 = vmatpush3.bf16.msra.mxu0 %v2977_v51  ;;  %v100_v11 = vld [vmem:[#allocation7 + $0x150] sm:$0xff]  ;;  %v101_v14 = vld [vmem:[#allocation7 + $0x158] sm:$0xff]  ;;  %v87_v18 = vld [vmem:[#allocation7 + $0xe8] sm:$0xff]  ;;  %v3003_v23 = vpack.c.bf16 %v69_v10, %v68_v9 }
  0x48   :  { %2235 = vmatprep.subr.bf16.mxu0 %v2983_v55  ;;  %v118_v20 = vld [vmem:[#allocation7 + $0x1e0] sm:$0xff]  ;;  %v119_v22 = vld [vmem:[#allocation7 + $0x1e8] sm:$0xff]  ;;  %v3007_v27 = vpack.c.bf16 %v101_v14, %v100_v11  ;;  %v3009_v28 = vpack.c.bf16 %v87_v18, %v86_v15  ;;  %v88_v36 = vld [vmem:[#allocation7 + $0xf0] sm:$0xff] }
  0x49   :  { %2265 = vmatpush3.bf16.msra.mxu1 %v2981_v54  ;;  %v70_v24 = vld [vmem:[#allocation7 + $0x60] sm:$0xff]  ;;  %v71_v29 = vld [vmem:[#allocation7 + $0x68] sm:$0xff]  ;;  %v3012_v32 = vpack.c.bf16 %v119_v22, %v118_v20  ;;  %v89_v37 = vld [vmem:[#allocation7 + $0xf8] sm:$0xff] }
  0x4a   :  { %2267 = vmatprep.subr.bf16.mxu1 %v2986_v59  ;;  %v102_v30 = vld [vmem:[#allocation7 + $0x160] sm:$0xff]  ;;  %v103_v35 = vld [vmem:[#allocation7 + $0x168] sm:$0xff]  ;;  %v120_v42 = vld [vmem:[#allocation7 + $0x1f0] sm:$0xff]  ;;  %v3016_v45 = vpack.c.bf16 %v71_v29, %v70_v24  ;;  %v3023_v49 = vpack.c.bf16 %v89_v37, %v88_v36 }
  0x4b   :  { %2237 = vmatpush3.bf16.msra.mxu0 %v2989_v4  ;;  %v315_v31 = vld [vmem:[#allocation2] sm:$0xff]  ;;  %v121_v44 = vld [vmem:[#allocation7 + $0x1f8] sm:$0xff]  ;;  %v3021_v48 = vpack.c.bf16 %v103_v35, %v102_v30  ;;  %v72_v50 = vld [vmem:[#allocation7 + $0x70] sm:$0xff] }
  0x4c   :  { %2239 = vmatprep.subr.bf16.mxu0 %v2995_v6  ;;  %v336_v40 = vrot.slane %v315_v31, %v3000_v19  ;;  %v329_v41 = vcombine.high %v315_v31, %v315_v31  ;;  %v73_v52 = vld [vmem:[#allocation7 + $0x78] sm:$0xff]  ;;  %v104_v53 = vld [vmem:[#allocation7 + $0x170] sm:$0xff]  ;;  %v3026_v56 = vpack.c.bf16 %v121_v44, %v120_v42  ;;  %v138_v58 = vld [vmem:[#allocation7 + $0x280] sm:$0xff] }
  0x4d   :  { %2269 = vmatpush3.bf16.msra.mxu1 %v2993_v5  ;;  %v105_v57 = vld [vmem:[#allocation7 + $0x178] sm:$0xff]  ;;  %v139_v60 = vld [vmem:[#allocation7 + $0x288] sm:$0xff]  ;;  %v170_v62 = vld [vmem:[#allocation7 + $0x380] sm:$0xff]  ;;  %v3029_v0 = vpack.c.bf16 %v73_v52, %v72_v50 }
  0x4e   :  { %2271 = vmatprep.subr.bf16.mxu1 %v2998_v13  ;;  %v344_v46 = vcombine.high %v336_v40, %v336_v40  ;;  %v343_v47 = vrot.slane %v329_v41, %v3000_v19  ;;  %v171_v63 = vld [vmem:[#allocation7 + $0x388] sm:$0xff]  ;;  %v3033_v1 = vpack.c.bf16 %v105_v57, %v104_v53  ;;  %v3035_v2 = vpack.c.bf16 %v139_v60, %v138_v58  ;;  %v122_v9 = vld [vmem:[#allocation7 + $0x200] sm:$0xff]  ;;  %v140_v18 = vld [vmem:[#allocation7 + $0x290] sm:$0xff] }
  0x4f   :  { %2241 = vmatpush3.bf16.msra.mxu0 %v3003_v23  ;;  %v123_v10 = vld [vmem:[#allocation7 + $0x208] sm:$0xff]  ;;  %v154_v11 = vld [vmem:[#allocation7 + $0x300] sm:$0xff]  ;;  %v3038_v14 = vpack.c.bf16 %v171_v63, %v170_v62  ;;  %v141_v20 = vld [vmem:[#allocation7 + $0x298] sm:$0xff] }
  0x50   :  { %2243 = vmatprep.subr.bf16.mxu0 %v3009_v28  ;;  %477 = vmatprep.mubr.f32.mxu0 %v344_v46  ;;  %v345_v61 = vcombine.high %v343_v47, %v343_v47  ;;  %v155_v15 = vld [vmem:[#allocation7 + $0x308] sm:$0xff]  ;;  %v172_v22 = vld [vmem:[#allocation7 + $0x390] sm:$0xff]  ;;  %v173_v24 = vld [vmem:[#allocation7 + $0x398] sm:$0xff]  ;;  %v3041_v29 = vpack.c.bf16 %v123_v10, %v122_v9  ;;  %v3047_v31 = vpack.c.bf16 %v141_v20, %v140_v18 }
  0x51   :  { %2273 = vmatpush3.bf16.msra.mxu1 %v3007_v27  ;;  %v3045_v30 = vpack.c.bf16 %v155_v15, %v154_v11  ;;  %v124_v35 = vld [vmem:[#allocation7 + $0x210] sm:$0xff]  ;;  %v125_v36 = vld [vmem:[#allocation7 + $0x218] sm:$0xff]  ;;  %v3050_v41 = vpack.c.bf16 %v173_v24, %v172_v22  ;;  %v142_v44 = vld [vmem:[#allocation7 + $0x2a0] sm:$0xff] }
  0x52   :  { %2275 = vmatprep.subr.bf16.mxu1 %v3012_v32  ;;  %547 = vmatprep.mubr.f32.mxu1 %v345_v61  ;;  %v156_v37 = vld [vmem:[#allocation7 + $0x310] sm:$0xff]  ;;  %v157_v42 = vld [vmem:[#allocation7 + $0x318] sm:$0xff]  ;;  %v143_v46 = vld [vmem:[#allocation7 + $0x2a8] sm:$0xff]  ;;  %v3053_v53 = vpack.c.bf16 %v125_v36, %v124_v35 }
  0x53   :  { %2245 = vmatpush3.bf16.msra.mxu0 %v3016_v45  ;;  %v174_v50 = vld [vmem:[#allocation7 + $0x3a0] sm:$0xff]  ;;  %v175_v52 = vld [vmem:[#allocation7 + $0x3a8] sm:$0xff]  ;;  %v3057_v57 = vpack.c.bf16 %v157_v42, %v156_v37  ;;  %v3059_v58 = vpack.c.bf16 %v143_v46, %v142_v44  ;;  %v144_v9 = vld [vmem:[#allocation7 + $0x2b0] sm:$0xff] }
  0x54   :  { %2247 = vmatprep.subr.bf16.mxu0 %v3023_v49  ;;  %3614 = vst [vmem:[#allocation15_spill] sm:$0xff] %v3053_v53  ;;  %v126_v60 = vld [vmem:[#allocation7 + $0x220] sm:$0xff]  ;;  %v127_v61 = vld [vmem:[#allocation7 + $0x228] sm:$0xff]  ;;  %v176_v10 = vld [vmem:[#allocation7 + $0x3b0] sm:$0xff] }
  0x55   :  { %2277 = vmatpush3.bf16.msra.mxu1 %v3021_v48  ;;  %3615 = vst [vmem:[#allocation16_spill] sm:$0xff] %v3057_v57  ;;  %3616 = vst [vmem:[#allocation17_spill] sm:$0xff] %v3059_v58  ;;  %v158_v62 = vld [vmem:[#allocation7 + $0x320] sm:$0xff]  ;;  %v159_v63 = vld [vmem:[#allocation7 + $0x328] sm:$0xff]  ;;  %v3065_v15 = vpack.c.bf16 %v127_v61, %v126_v60 }
  0x56   :  { %2279 = vmatprep.subr.bf16.mxu1 %v3026_v56  ;;  %v177_v11 = vld [vmem:[#allocation7 + $0x3b8] sm:$0xff]  ;;  %v3069_v18 = vpack.c.bf16 %v159_v63, %v158_v62  ;;  %v128_v22 = vld [vmem:[#allocation7 + $0x230] sm:$0xff]  ;;  %v146_v42 = vld [vmem:[#allocation7 + $0x2c0] sm:$0xff] }
  0x57   :  { %2249 = vmatpush3.bf16.msra.mxu0 %v3029_v0  ;;  %3618 = vst [vmem:[#allocation19_spill] sm:$0xff] %v3065_v15  ;;  %v129_v24 = vld [vmem:[#allocation7 + $0x238] sm:$0xff]  ;;  %v160_v35 = vld [vmem:[#allocation7 + $0x330] sm:$0xff]  ;;  %v3074_v36 = vpack.c.bf16 %v177_v11, %v176_v10  ;;  %v147_v44 = vld [vmem:[#allocation7 + $0x2c8] sm:$0xff] }
  0x58   :  { %2283 = vmatprep.subr.bf16.mxu0 %v3035_v2  ;;  %3619 = vst [vmem:[#allocation20_spill] sm:$0xff] %v3069_v18  ;;  %v161_v37 = vld [vmem:[#allocation7 + $0x338] sm:$0xff]  ;;  %v178_v46 = vld [vmem:[#allocation7 + $0x3c0] sm:$0xff]  ;;  %v3077_v60 = vpack.c.bf16 %v129_v24, %v128_v22  ;;  %v131_v10 = vld [vmem:[#allocation7 + $0x248] sm:$0xff] }
  0x59   :  { %2281 = vmatpush3.bf16.msra.mxu1 %v3033_v1  ;;  %3621 = vst [vmem:[#allocation22_spill] sm:$0xff] %v3074_v36  ;;  %v3084_v63 = vpack.c.bf16 %v161_v37, %v160_v35  ;;  %v162_v11 = vld [vmem:[#allocation7 + $0x340] sm:$0xff]  ;;  %v163_v22 = vld [vmem:[#allocation7 + $0x348] sm:$0xff]  ;;  %v148_v24 = vld [vmem:[#allocation7 + $0x2d0] sm:$0xff] }
  0x5a   :  { %2315 = vmatprep.subr.bf16.mxu1 %v3038_v14  ;;  %478 = vmatmul.mubr.f32.vlgmr.msra.gmra.mrb[0].mxu0 %v336_v40  ;;  %v3062_v40 = vpack.c.bf16 %v175_v52, %v174_v50  ;;  %v179_v50 = vld [vmem:[#allocation7 + $0x3c8] sm:$0xff]  ;;  %3622 = vst [vmem:[#allocation23_spill] sm:$0xff] %v3077_v60  ;;  %v180_v35 = vld [vmem:[#allocation7 + $0x3d0] sm:$0xff]  ;;  %v181_v37 = vld [vmem:[#allocation7 + $0x3d8] sm:$0xff] }
  0x5b   :  { %2285 = vmatpush3.bf16.msra.mxu0 %v3041_v29  ;;  %v316_v52 = vld [vmem:[#allocation2 + $0x8] sm:$0xff]  ;;  %3623 = vst [vmem:[#allocation24_spill] sm:$0xff] %v3084_v63 }
  0x5c   :  { %548 = vmatmul.mubr.f32.vlgmr.msra.gmra.mrb[0].mxu1 %v343_v47  ;;  %2287 = vmatprep.subr.bf16.mxu0 %v3047_v31  ;;  %3617 = vst [vmem:[#allocation18_spill] sm:$0xff] %v3062_v40  ;;  %v145_v47 = vld [vmem:[#allocation7 + $0x2b8] sm:$0xff]  ;;  %v3080_v61 = vrot.slane %v316_v52, %v3000_v19  ;;  %v346_v62 = vcombine.high %v316_v52, %v316_v52 }
  0x5d   :  { %2317 = vmatpush3.bf16.msra.mxu1 %v3045_v30  ;;  %v3071_v20 = vpack.c.bf16 %v145_v47, %v144_v9  ;;  %v3086_v9 = vpack.c.bf16 %v147_v44, %v146_v42  ;;  %v130_v47 = vld [vmem:[#allocation7 + $0x240] sm:$0xff] }
  0x5e   :  { %2319 = vmatprep.subr.bf16.mxu1 %v3050_v41  ;;  %v361_v52 = vcombine.high %v3080_v61, %v3080_v61  ;;  %v3097_v42 = vpack.c.bf16 %v131_v10, %v130_v47  ;;  %v165_v47 = vld [vmem:[#allocation7 + $0x358] sm:$0xff]  ;;  %v150_v10 = vld [vmem:[#allocation7 + $0x2e0] sm:$0xff] }
  0x5f   :  { %2289 = vmatpush3.bf16.msra.mxu0 %v3053_v53  ;;  %3620 = vst [vmem:[#allocation21_spill] sm:$0xff] %v3071_v20  ;;  %3624 = vst [vmem:[#allocation25_spill] sm:$0xff] %v3086_v9 }
  0x60   :  { %2291 = vmatprep.subr.bf16.mxu0 %v3059_v58  ;;  %3626 = vst [vmem:[#allocation27_spill] sm:$0xff] %v3097_v42  ;;  %617 = vmatprep.mubr.f32.mxu0 %v361_v52  ;;  %v151_v52 = vld [vmem:[#allocation7 + $0x2e8] sm:$0xff]  ;;  %v182_v58 = vld [vmem:[#allocation7 + $0x3e0] sm:$0xff] }
  0x61   :  { %2321 = vmatpush3.bf16.msra.mxu1 %v3057_v57  ;;  %v183_v57 = vld [vmem:[#allocation7 + $0x3e8] sm:$0xff] }
  0x62   :  { %2323 = vmatprep.subr.bf16.mxu1 %v3062_v40  ;;  %v149_v40 = vld [vmem:[#allocation7 + $0x2d8] sm:$0xff] }
  0x63   :  { %2293 = vmatpush3.bf16.msra.mxu0 %v3065_v15  ;;  %v3089_v15 = vpack.c.bf16 %v179_v50, %v178_v46  ;;  %v3103_v46 = vpack.c.bf16 %v163_v22, %v162_v11  ;;  %v3105_v50 = vpack.c.bf16 %v149_v40, %v148_v24  ;;  %v3117_v11 = vpack.c.bf16 %v151_v52, %v150_v10  ;;  %v134_v22 = vld [vmem:[#allocation7 + $0x260] sm:$0xff]  ;;  %v135_v24 = vld [vmem:[#allocation7 + $0x268] sm:$0xff]  ;;  %v136_v10 = vld [vmem:[#allocation7 + $0x270] sm:$0xff] }
  0x64   :  { %2295 = vmatprep.subr.bf16.mxu0 %v3071_v20  ;;  %v164_v20 = vld [vmem:[#allocation7 + $0x350] sm:$0xff] }
  0x65   :  { %2325 = vmatpush3.bf16.msra.mxu1 %v3069_v18  ;;  %3625 = vst [vmem:[#allocation26_spill] sm:$0xff] %v3089_v15  ;;  %v3094_v18 = vrot.slane %v346_v62, %v3000_v19  ;;  %3627 = vst [vmem:[#allocation28_spill] sm:$0xff] %v3103_v46  ;;  %v132_v62 = vld [vmem:[#allocation7 + $0x250] sm:$0xff]  ;;  %v3115_v40 = vpack.c.bf16 %v165_v47, %v164_v20 }
  0x66   :  { %2327 = vmatprep.subr.bf16.mxu1 %v3074_v36  ;;  %3628 = vst [vmem:[#allocation29_spill] sm:$0xff] %v3105_v50  ;;  %v133_v36 = vld [vmem:[#allocation7 + $0x258] sm:$0xff]  ;;  %3632 = vst [vmem:[#allocation33_spill] sm:$0xff] %v3117_v11 }
  0x67   :  { %2297 = vmatpush3.bf16.msra.mxu0 %v3077_v60  ;;  %v362_v44 = vcombine.high %v3094_v18, %v3094_v18  ;;  %v3108_v60 = vpack.c.bf16 %v181_v37, %v180_v35  ;;  %3631 = vst [vmem:[#allocation32_spill] sm:$0xff] %v3115_v40  ;;  %v166_v35 = vld [vmem:[#allocation7 + $0x360] sm:$0xff]  ;;  %v3120_v37 = vpack.c.bf16 %v183_v57, %v182_v58  ;;  %v137_v57 = vld [vmem:[#allocation7 + $0x278] sm:$0xff]  ;;  %v168_v58 = vld [vmem:[#allocation7 + $0x370] sm:$0xff] }
  0x68   :  { %2299 = vmatprep.subr.bf16.mxu0 %v3086_v9  ;;  %v3111_v9 = vpack.c.bf16 %v133_v36, %v132_v62  ;;  %v184_v36 = vld [vmem:[#allocation7 + $0x3f0] sm:$0xff]  ;;  %v185_v62 = vld [vmem:[#allocation7 + $0x3f8] sm:$0xff] }
  0x69   :  { %2329 = vmatpush3.bf16.msra.mxu1 %v3084_v63  ;;  %3629 = vst [vmem:[#allocation30_spill] sm:$0xff] %v3108_v60  ;;  %687 = vmatprep.mubr.f32.mxu1 %v362_v44  ;;  %3633 = vst [vmem:[#allocation34_spill] sm:$0xff] %v3120_v37  ;;  %v167_v44 = vld [vmem:[#allocation7 + $0x368] sm:$0xff]  ;;  %v3132_v52 = vpack.c.bf16 %v185_v62, %v184_v36  ;;  %v218_v36 = vld [vmem:[#allocation7 + $0x500] sm:$0xff] }
  0x6a   :  { %2331 = vmatprep.subr.bf16.mxu1 %v3089_v15  ;;  %3630 = vst [vmem:[#allocation31_spill] sm:$0xff] %v3111_v9  ;;  %v152_v15 = vld [vmem:[#allocation7 + $0x2f0] sm:$0xff]  ;;  %v3127_v20 = vpack.c.bf16 %v167_v44, %v166_v35  ;;  %v186_v35 = vld [vmem:[#allocation7 + $0x400] sm:$0xff]  ;;  %v187_v44 = vld [vmem:[#allocation7 + $0x408] sm:$0xff] }
  0x6b   :  { %2301 = vmatpush3.bf16.msra.mxu0 %v3097_v42  ;;  %v153_v42 = vld [vmem:[#allocation7 + $0x2f8] sm:$0xff]  ;;  %3637 = vst [vmem:[#allocation38_spill] sm:$0xff] %v3132_v52  ;;  %v219_v62 = vld [vmem:[#allocation7 + $0x508] sm:$0xff] }
  0x6c   :  { %2303 = vmatprep.subr.bf16.mxu0 %v3105_v50  ;;  %3635 = vst [vmem:[#allocation36_spill] sm:$0xff] %v3127_v20  ;;  %v3129_v47 = vpack.c.bf16 %v153_v42, %v152_v15  ;;  %v202_v50 = vld [vmem:[#allocation7 + $0x480] sm:$0xff]  ;;  %v299_v63 = vld [vmem:[#allocation7 + $0x788] sm:$0xff] }
  0x6d   :  { %2333 = vmatpush3.bf16.msra.mxu1 %v3103_v46  ;;  %v3123_v46 = vpack.c.bf16 %v135_v24, %v134_v22  ;;  %v234_v22 = vld [vmem:[#allocation7 + $0x580] sm:$0xff]  ;;  %v235_v24 = vld [vmem:[#allocation7 + $0x588] sm:$0xff] }
  0x6e   :  { %2335 = vmatprep.subr.bf16.mxu1 %v3108_v60  ;;  %3636 = vst [vmem:[#allocation37_spill] sm:$0xff] %v3129_v47  ;;  %v169_v60 = vld [vmem:[#allocation7 + $0x378] sm:$0xff] }
  0x6f   :  { %2305 = vmatpush3.bf16.msra.mxu0 %v3111_v9  ;;  %3634 = vst [vmem:[#allocation35_spill] sm:$0xff] %v3123_v46  ;;  %v203_v9 = vld [vmem:[#allocation7 + $0x488] sm:$0xff]  ;;  %v3139_v15 = vpack.c.bf16 %v169_v60, %v168_v58  ;;  %v317_v60 = vld [vmem:[#allocation2 + $0x10] sm:$0xff]  ;;  %v189_v58 = vld [vmem:[#allocation7 + $0x418] sm:$0xff] }
  0x70   :  { %2307 = vmatprep.subr.bf16.mxu0 %v3117_v11  ;;  %v3141_v42 = vpack.c.bf16 %v203_v9, %v202_v50  ;;  %v204_v11 = vld [vmem:[#allocation7 + $0x490] sm:$0xff] }
  0x71   :  { %2337 = vmatpush3.bf16.msra.mxu1 %v3115_v40  ;;  %v3135_v40 = vpack.c.bf16 %v137_v57, %v136_v10  ;;  %3639 = vst [vmem:[#allocation40_spill] sm:$0xff] %v3139_v15  ;;  %v236_v10 = vld [vmem:[#allocation7 + $0x590] sm:$0xff]  ;;  %v237_v57 = vld [vmem:[#allocation7 + $0x598] sm:$0xff] }
  0x72   :  { %2339 = vmatprep.subr.bf16.mxu1 %v3120_v37  ;;  %3640 = vst [vmem:[#allocation41_spill] sm:$0xff] %v3141_v42  ;;  %v3144_v37 = vpack.c.bf16 %v235_v24, %v234_v22  ;;  %v188_v50 = vld [vmem:[#allocation7 + $0x410] sm:$0xff]  ;;  %v3156_v24 = vrot.slane %v317_v60, %v3000_v19 }
  0x73   :  { %2309 = vmatpush3.bf16.msra.mxu0 %v3123_v46  ;;  %3638 = vst [vmem:[#allocation39_spill] sm:$0xff] %v3135_v40  ;;  %v205_v46 = vld [vmem:[#allocation7 + $0x498] sm:$0xff]  ;;  %v220_v22 = vld [vmem:[#allocation7 + $0x510] sm:$0xff] }
  0x74   :  { %2311 = vmatprep.subr.bf16.mxu0 %v3129_v47  ;;  %3641 = vst [vmem:[#allocation42_spill] sm:$0xff] %v3144_v37  ;;  %v3149_v47 = vpack.c.bf16 %v219_v62, %v218_v36  ;;  %v3153_v9 = vpack.c.bf16 %v205_v46, %v204_v11  ;;  %v206_v36 = vld [vmem:[#allocation7 + $0x4a0] sm:$0xff]  ;;  %v207_v62 = vld [vmem:[#allocation7 + $0x4a8] sm:$0xff]  ;;  %v378_v46 = vcombine.high %v3156_v24, %v3156_v24 }
  0x75   :  { %2341 = vmatpush3.bf16.msra.mxu1 %v3127_v20  ;;  %v3147_v20 = vpack.c.bf16 %v187_v44, %v186_v35  ;;  %v3159_v35 = vpack.c.bf16 %v237_v57, %v236_v10  ;;  %v221_v44 = vld [vmem:[#allocation7 + $0x518] sm:$0xff]  ;;  %v190_v57 = vld [vmem:[#allocation7 + $0x420] sm:$0xff] }
  0x76   :  { %2343 = vmatprep.subr.bf16.mxu1 %v3132_v52  ;;  %3643 = vst [vmem:[#allocation44_spill] sm:$0xff] %v3149_v47  ;;  %3644 = vst [vmem:[#allocation45_spill] sm:$0xff] %v3153_v9  ;;  %v363_v52 = vcombine.high %v317_v60, %v317_v60  ;;  %v3169_v60 = vpack.c.bf16 %v189_v58, %v188_v50  ;;  %v3173_v10 = vpack.c.bf16 %v221_v44, %v220_v22  ;;  %v208_v50 = vld [vmem:[#allocation7 + $0x4b0] sm:$0xff]  ;;  %v209_v58 = vld [vmem:[#allocation7 + $0x4b8] sm:$0xff] }
  0x77   :  { %2313 = vmatpush3.bf16.msra.mxu0 %v3135_v40  ;;  %3642 = vst [vmem:[#allocation43_spill] sm:$0xff] %v3147_v20  ;;  %3645 = vst [vmem:[#allocation46_spill] sm:$0xff] %v3159_v35  ;;  %v222_v40 = vld [vmem:[#allocation7 + $0x520] sm:$0xff] }
  0x78   :  { %2347 = vmatprep.subr.bf16.mxu0 %v3141_v42  ;;  %v239_v42 = vld [vmem:[#allocation7 + $0x5a8] sm:$0xff]  ;;  %v3165_v11 = vrot.slane %v363_v52, %v3000_v19  ;;  %3646 = vst [vmem:[#allocation47_spill] sm:$0xff] %v3169_v60  ;;  %3647 = vst [vmem:[#allocation48_spill] sm:$0xff] %v3173_v10 }
  0x79   :  { %2345 = vmatpush3.bf16.msra.mxu1 %v3139_v15  ;;  %v238_v15 = vld [vmem:[#allocation7 + $0x5a0] sm:$0xff] }
  0x7a   :  { %2379 = vmatprep.subr.bf16.mxu1 %v3144_v37  ;;  %618 = vmatmul.mubr.f32.vlgmr.msra.gmra.mrb[2].mxu0 %v3080_v61  ;;  %v3175_v61 = vpack.c.bf16 %v207_v62, %v206_v36  ;;  %v191_v37 = vld [vmem:[#allocation7 + $0x428] sm:$0xff]  ;;  %v379_v52 = vcombine.high %v3165_v11, %v3165_v11  ;;  %v3189_v36 = vpack.c.bf16 %v209_v58, %v208_v50  ;;  %v224_v62 = vld [vmem:[#allocation7 + $0x530] sm:$0xff]  ;;  %v194_v50 = vld [vmem:[#allocation7 + $0x440] sm:$0xff] }
  0x7b   :  { %2349 = vmatpush3.bf16.msra.mxu0 %v3147_v20  ;;  %v3180_v20 = vpack.c.bf16 %v239_v42, %v238_v15  ;;  %757 = vmatprep.mubr.f32.mxu0 %v378_v46  ;;  %v3183_v22 = vpack.c.bf16 %v191_v37, %v190_v57  ;;  %v192_v15 = vld [vmem:[#allocation7 + $0x430] sm:$0xff]  ;;  %v193_v42 = vld [vmem:[#allocation7 + $0x438] sm:$0xff]  ;;  %v242_v37 = vld [vmem:[#allocation7 + $0x5c0] sm:$0xff] }
  0x7c   :  { %688 = vmatmul.mubr.f32.vlgmr.msra.gmra.mrb[2].mxu1 %v3094_v18  ;;  %2351 = vmatprep.subr.bf16.mxu0 %v3153_v9  ;;  %3648 = vst [vmem:[#allocation49_spill] sm:$0xff] %v3175_v61  ;;  %v223_v18 = vld [vmem:[#allocation7 + $0x528] sm:$0xff]  ;;  %v241_v9 = vld [vmem:[#allocation7 + $0x5b8] sm:$0xff]  ;;  %3652 = vst [vmem:[#allocation53_spill] sm:$0xff] %v3189_v36 }
  0x7d   :  { %2381 = vmatpush3.bf16.msra.mxu1 %v3149_v47  ;;  %3649 = vst [vmem:[#allocation50_spill] sm:$0xff] %v3180_v20  ;;  %v240_v47 = vld [vmem:[#allocation7 + $0x5b0] sm:$0xff]  ;;  %827 = vmatprep.mubr.f32.mxu1 %v379_v52  ;;  %3650 = vst [vmem:[#allocation51_spill] sm:$0xff] %v3183_v22  ;;  %v3187_v44 = vpack.c.bf16 %v223_v18, %v222_v40  ;;  %v225_v52 = vld [vmem:[#allocation7 + $0x538] sm:$0xff] }
  0x7e   :  { %2383 = vmatprep.subr.bf16.mxu1 %v3159_v35  ;;  %v3192_v46 = vpack.c.bf16 %v241_v9, %v240_v47  ;;  %v210_v35 = vld [vmem:[#allocation7 + $0x4c0] sm:$0xff]  ;;  %v243_v57 = vld [vmem:[#allocation7 + $0x5c8] sm:$0xff]  ;;  %v3199_v40 = vpack.c.bf16 %v225_v52, %v224_v62  ;;  %v196_v62 = vld [vmem:[#allocation7 + $0x450] sm:$0xff] }
  0x7f   :  { %2353 = vmatpush3.bf16.msra.mxu0 %v3169_v60  ;;  %3651 = vst [vmem:[#allocation52_spill] sm:$0xff] %v3187_v44  ;;  %v211_v60 = vld [vmem:[#allocation7 + $0x4c8] sm:$0xff]  ;;  %v226_v9 = vld [vmem:[#allocation7 + $0x540] sm:$0xff]  ;;  %v3204_v58 = vpack.c.bf16 %v243_v57, %v242_v37  ;;  %v197_v52 = vld [vmem:[#allocation7 + $0x458] sm:$0xff] }
  0x80   :  { %2355 = vmatprep.subr.bf16.mxu0 %v3175_v61  ;;  %3653 = vst [vmem:[#allocation54_spill] sm:$0xff] %v3192_v46  ;;  %3655 = vst [vmem:[#allocation56_spill] sm:$0xff] %v3199_v40  ;;  %v3201_v18 = vpack.c.bf16 %v211_v60, %v210_v35  ;;  %v195_v47 = vld [vmem:[#allocation7 + $0x448] sm:$0xff]  ;;  %v212_v61 = vld [vmem:[#allocation7 + $0x4d0] sm:$0xff] }
  0x81   :  { %2385 = vmatpush3.bf16.msra.mxu1 %v3173_v10  ;;  %v3195_v10 = vpack.c.bf16 %v193_v42, %v192_v15  ;;  %3657 = vst [vmem:[#allocation58_spill] sm:$0xff] %v3204_v58  ;;  %v244_v15 = vld [vmem:[#allocation7 + $0x5d0] sm:$0xff]  ;;  %v245_v42 = vld [vmem:[#allocation7 + $0x5d8] sm:$0xff] }
  0x82   :  { %2387 = vmatprep.subr.bf16.mxu1 %v3180_v20  ;;  %3656 = vst [vmem:[#allocation57_spill] sm:$0xff] %v3201_v18  ;;  %v227_v20 = vld [vmem:[#allocation7 + $0x548] sm:$0xff]  ;;  %v228_v37 = vld [vmem:[#allocation7 + $0x550] sm:$0xff]  ;;  %v3216_v57 = vpack.c.bf16 %v245_v42, %v244_v15  ;;  %v230_v15 = vld [vmem:[#allocation7 + $0x560] sm:$0xff] }
  0x83   :  { %2357 = vmatpush3.bf16.msra.mxu0 %v3183_v22  ;;  %3654 = vst [vmem:[#allocation55_spill] sm:$0xff] %v3195_v10  ;;  %v213_v22 = vld [vmem:[#allocation7 + $0x4d8] sm:$0xff]  ;;  %v3211_v35 = vpack.c.bf16 %v227_v20, %v226_v9  ;;  %v199_v9 = vld [vmem:[#allocation7 + $0x468] sm:$0xff] }
  0x84   :  { %2359 = vmatprep.subr.bf16.mxu0 %v3189_v36  ;;  %v3213_v60 = vpack.c.bf16 %v213_v22, %v212_v61  ;;  %3661 = vst [vmem:[#allocation62_spill] sm:$0xff] %v3216_v57  ;;  %v214_v36 = vld [vmem:[#allocation7 + $0x4e0] sm:$0xff] }
  0x85   :  { %2389 = vmatpush3.bf16.msra.mxu1 %v3187_v44  ;;  %v3207_v44 = vpack.c.bf16 %v195_v47, %v194_v50  ;;  %3659 = vst [vmem:[#allocation60_spill] sm:$0xff] %v3211_v35  ;;  %v246_v50 = vld [vmem:[#allocation7 + $0x5e0] sm:$0xff]  ;;  %v247_v47 = vld [vmem:[#allocation7 + $0x5e8] sm:$0xff] }
  0x86   :  { %2391 = vmatprep.subr.bf16.mxu1 %v3192_v46  ;;  %3660 = vst [vmem:[#allocation61_spill] sm:$0xff] %v3213_v60  ;;  %v229_v46 = vld [vmem:[#allocation7 + $0x558] sm:$0xff]  ;;  %v198_v22 = vld [vmem:[#allocation7 + $0x460] sm:$0xff]  ;;  %v3228_v42 = vpack.c.bf16 %v247_v47, %v246_v50  ;;  %v232_v47 = vld [vmem:[#allocation7 + $0x570] sm:$0xff] }
  0x87   :  { %2361 = vmatpush3.bf16.msra.mxu0 %v3195_v10  ;;  %3658 = vst [vmem:[#allocation59_spill] sm:$0xff] %v3207_v44  ;;  %v215_v10 = vld [vmem:[#allocation7 + $0x4e8] sm:$0xff]  ;;  %v3223_v20 = vpack.c.bf16 %v229_v46, %v228_v37  ;;  %v318_v46 = vld [vmem:[#allocation2 + $0x18] sm:$0xff]  ;;  %v200_v37 = vld [vmem:[#allocation7 + $0x470] sm:$0xff] }
  0x88   :  { %2363 = vmatprep.subr.bf16.mxu0 %v3201_v18  ;;  %v3225_v61 = vpack.c.bf16 %v215_v10, %v214_v36  ;;  %3665 = vst [vmem:[#allocation66_spill] sm:$0xff] %v3228_v42  ;;  %v216_v18 = vld [vmem:[#allocation7 + $0x4f0] sm:$0xff]  ;;  %v201_v50 = vld [vmem:[#allocation7 + $0x478] sm:$0xff]  ;;  %v380_v53 = vcombine.high %v318_v46, %v318_v46 }
  0x89   :  { %2393 = vmatpush3.bf16.msra.mxu1 %v3199_v40  ;;  %v3219_v40 = vpack.c.bf16 %v197_v52, %v196_v62  ;;  %3663 = vst [vmem:[#allocation64_spill] sm:$0xff] %v3223_v20  ;;  %v248_v62 = vld [vmem:[#allocation7 + $0x5f0] sm:$0xff]  ;;  %v249_v52 = vld [vmem:[#allocation7 + $0x5f8] sm:$0xff] }
  0x8a   :  { %2395 = vmatprep.subr.bf16.mxu1 %v3204_v58  ;;  %3664 = vst [vmem:[#allocation65_spill] sm:$0xff] %v3225_v61  ;;  %v231_v58 = vld [vmem:[#allocation7 + $0x568] sm:$0xff] }
  0x8b   :  { %2365 = vmatpush3.bf16.msra.mxu0 %v3207_v44  ;;  %3662 = vst [vmem:[#allocation63_spill] sm:$0xff] %v3219_v40  ;;  %v217_v44 = vld [vmem:[#allocation7 + $0x4f8] sm:$0xff]  ;;  %v3235_v10 = vpack.c.bf16 %v231_v58, %v230_v15  ;;  %v250_v58 = vld [vmem:[#allocation7 + $0x600] sm:$0xff]  ;;  %v251_v15 = vld [vmem:[#allocation7 + $0x608] sm:$0xff] }
  0x8c   :  { %2367 = vmatprep.subr.bf16.mxu0 %v3213_v60  ;;  %v3237_v36 = vpack.c.bf16 %v217_v44, %v216_v18  ;;  %v233_v60 = vld [vmem:[#allocation7 + $0x578] sm:$0xff] }
  0x8d   :  { %2397 = vmatpush3.bf16.msra.mxu1 %v3211_v35  ;;  %v3231_v35 = vpack.c.bf16 %v199_v9, %v198_v22  ;;  %3667 = vst [vmem:[#allocation68_spill] sm:$0xff] %v3235_v10  ;;  %v267_v22 = vld [vmem:[#allocation7 + $0x688] sm:$0xff]  ;;  %v298_v9 = vld [vmem:[#allocation7 + $0x780] sm:$0xff]  ;;  %v3247_v44 = vpack.c.bf16 %v233_v60, %v232_v47  ;;  %v3258_v60 = vrot.slane %v380_v53, %v3000_v19  ;;  %v285_v53 = vld [vmem:[#allocation7 + $0x718] sm:$0xff] }
  0x8e   :  { %2399 = vmatprep.subr.bf16.mxu1 %v3216_v57  ;;  %3668 = vst [vmem:[#allocation69_spill] sm:$0xff] %v3237_v36  ;;  %v3240_v57 = vpack.c.bf16 %v249_v52, %v248_v62  ;;  %v282_v62 = vld [vmem:[#allocation7 + $0x700] sm:$0xff]  ;;  %v3252_v52 = vpack.c.bf16 %v299_v63, %v298_v9  ;;  %v284_v9 = vld [vmem:[#allocation7 + $0x710] sm:$0xff] }
  0x8f   :  { %2369 = vmatpush3.bf16.msra.mxu0 %v3219_v40  ;;  %3666 = vst [vmem:[#allocation67_spill] sm:$0xff] %v3231_v35  ;;  %v266_v40 = vld [vmem:[#allocation7 + $0x680] sm:$0xff]  ;;  %3671 = vst [vmem:[#allocation72_spill] sm:$0xff] %v3247_v44 }
  0x90   :  { %2371 = vmatprep.subr.bf16.mxu0 %v3225_v61  ;;  %3669 = vst [vmem:[#allocation70_spill] sm:$0xff] %v3240_v57  ;;  %v3243_v61 = vpack.c.bf16 %v201_v50, %v200_v37  ;;  %v3249_v18 = vpack.c.bf16 %v267_v22, %v266_v40  ;;  %3673 = vst [vmem:[#allocation74_spill] sm:$0xff] %v3252_v52  ;;  %v3255_v37 = vrot.slane %v318_v46, %v3000_v19  ;;  %v300_v50 = vld [vmem:[#allocation7 + $0x790] sm:$0xff]  ;;  %v253_v46 = vld [vmem:[#allocation7 + $0x618] sm:$0xff] }
  0x91   :  { %2401 = vmatpush3.bf16.msra.mxu1 %v3223_v20  ;;  %v268_v20 = vld [vmem:[#allocation7 + $0x690] sm:$0xff]  ;;  %v3261_v40 = vpack.c.bf16 %v251_v15, %v250_v58  ;;  %v302_v15 = vld [vmem:[#allocation7 + $0x7a0] sm:$0xff] }
  0x92   :  { %2403 = vmatprep.subr.bf16.mxu1 %v3228_v42  ;;  %3670 = vst [vmem:[#allocation71_spill] sm:$0xff] %v3243_v61  ;;  %3672 = vst [vmem:[#allocation73_spill] sm:$0xff] %v3249_v18  ;;  %v283_v42 = vld [vmem:[#allocation7 + $0x708] sm:$0xff]  ;;  %v252_v22 = vld [vmem:[#allocation7 + $0x610] sm:$0xff]  ;;  %v395_v58 = vcombine.high %v3255_v37, %v3255_v37 }
  0x93   :  { %2373 = vmatpush3.bf16.msra.mxu0 %v3231_v35  ;;  %v269_v35 = vld [vmem:[#allocation7 + $0x698] sm:$0xff]  ;;  %3674 = vst [vmem:[#allocation75_spill] sm:$0xff] %v3261_v40  ;;  %v3265_v63 = vpack.c.bf16 %v283_v42, %v282_v62  ;;  %v303_v42 = vld [vmem:[#allocation7 + $0x7a8] sm:$0xff] }
  0x94   :  { %2375 = vmatprep.subr.bf16.mxu0 %v3237_v36  ;;  %v3267_v47 = vpack.c.bf16 %v269_v35, %v268_v20  ;;  %v270_v36 = vld [vmem:[#allocation7 + $0x6a0] sm:$0xff]  ;;  %v396_v35 = vcombine.high %v3258_v60, %v3258_v60  ;;  %v3279_v20 = vpack.c.bf16 %v253_v46, %v252_v22  ;;  %v304_v22 = vld [vmem:[#allocation7 + $0x7b0] sm:$0xff]  ;;  %v305_v46 = vld [vmem:[#allocation7 + $0x7b8] sm:$0xff] }
  0x95   :  { %2405 = vmatpush3.bf16.msra.mxu1 %v3235_v10  ;;  %v301_v10 = vld [vmem:[#allocation7 + $0x798] sm:$0xff] }
  0x96   :  { %2407 = vmatprep.subr.bf16.mxu1 %v3240_v57  ;;  %v3270_v57 = vpack.c.bf16 %v301_v10, %v300_v50  ;;  %3676 = vst [vmem:[#allocation77_spill] sm:$0xff] %v3279_v20  ;;  %v3283_v10 = vpack.c.bf16 %v285_v53, %v284_v9  ;;  %v255_v50 = vld [vmem:[#allocation7 + $0x628] sm:$0xff]  ;;  %v256_v53 = vld [vmem:[#allocation7 + $0x630] sm:$0xff] }
  0x97   :  { %2377 = vmatpush3.bf16.msra.mxu0 %v3243_v61  ;;  %v271_v61 = vld [vmem:[#allocation7 + $0x6a8] sm:$0xff] }
  0x98   :  { %2411 = vmatprep.subr.bf16.mxu0 %v3249_v18  ;;  %3675 = vst [vmem:[#allocation76_spill] sm:$0xff] %v3270_v57  ;;  %3677 = vst [vmem:[#allocation78_spill] sm:$0xff] %v3283_v10  ;;  %v3285_v62 = vpack.c.bf16 %v271_v61, %v270_v36  ;;  %v3288_v18 = vpack.c.bf16 %v303_v42, %v302_v15  ;;  %v257_v15 = vld [vmem:[#allocation7 + $0x638] sm:$0xff]  ;;  %v288_v42 = vld [vmem:[#allocation7 + $0x730] sm:$0xff] }
  0x99   :  { %2409 = vmatpush3.bf16.msra.mxu1 %v3247_v44  ;;  %v272_v44 = vld [vmem:[#allocation7 + $0x6b0] sm:$0xff] }
  0x9a   :  { %2443 = vmatprep.subr.bf16.mxu1 %v3252_v52  ;;  %758 = vmatmul.mubr.f32.vlgmr.msra.gmra.mrb[4].mxu0 %v3156_v24  ;;  %3678 = vst [vmem:[#allocation79_spill] sm:$0xff] %v3285_v62  ;;  %v254_v24 = vld [vmem:[#allocation7 + $0x620] sm:$0xff]  ;;  %3679 = vst [vmem:[#allocation80_spill] sm:$0xff] %v3288_v18 }
  0x9b   :  { %2413 = vmatpush3.bf16.msra.mxu0 %v3261_v40  ;;  %v286_v52 = vld [vmem:[#allocation7 + $0x720] sm:$0xff]  ;;  %v287_v40 = vld [vmem:[#allocation7 + $0x728] sm:$0xff]  ;;  %897 = vmatprep.mubr.f32.mxu0 %v395_v58  ;;  %v3291_v9 = vpack.c.bf16 %v255_v50, %v254_v24  ;;  %v3300_v58 = vpack.c.bf16 %v305_v46, %v304_v22 }
  0x9c   :  { %828 = vmatmul.mubr.f32.vlgmr.msra.gmra.mrb[4].mxu1 %v3165_v11  ;;  %2415 = vmatprep.subr.bf16.mxu0 %v3267_v47  ;;  %v273_v11 = vld [vmem:[#allocation7 + $0x6b8] sm:$0xff]  ;;  %v3295_v61 = vpack.c.bf16 %v287_v40, %v286_v52  ;;  %v306_v24 = vld [vmem:[#allocation7 + $0x7c0] sm:$0xff]  ;;  %v307_v50 = vld [vmem:[#allocation7 + $0x7c8] sm:$0xff] }
  0x9d   :  { %2445 = vmatpush3.bf16.msra.mxu1 %v3265_v63  ;;  %967 = vmatprep.mubr.f32.mxu1 %v396_v35  ;;  %3680 = vst [vmem:[#allocation81_spill] sm:$0xff] %v3291_v9  ;;  %v3297_v36 = vpack.c.bf16 %v273_v11, %v272_v44  ;;  %3683 = vst [vmem:[#allocation84_spill] sm:$0xff] %v3300_v58  ;;  %v289_v35 = vld [vmem:[#allocation7 + $0x738] sm:$0xff]  ;;  %v258_v40 = vld [vmem:[#allocation7 + $0x640] sm:$0xff]  ;;  %v3312_v46 = vpack.c.bf16 %v307_v50, %v306_v24 }
  0x9e   :  { %2447 = vmatprep.subr.bf16.mxu1 %v3270_v57  ;;  %3681 = vst [vmem:[#allocation82_spill] sm:$0xff] %v3295_v61  ;;  %v274_v57 = vld [vmem:[#allocation7 + $0x6c0] sm:$0xff]  ;;  %v3307_v44 = vpack.c.bf16 %v289_v35, %v288_v42  ;;  %v259_v11 = vld [vmem:[#allocation7 + $0x648] sm:$0xff]  ;;  %v260_v42 = vld [vmem:[#allocation7 + $0x650] sm:$0xff] }
  0x9f   :  { %2417 = vmatpush3.bf16.msra.mxu0 %v3279_v20  ;;  %3682 = vst [vmem:[#allocation83_spill] sm:$0xff] %v3297_v36  ;;  %v275_v20 = vld [vmem:[#allocation7 + $0x6c8] sm:$0xff]  ;;  %v290_v22 = vld [vmem:[#allocation7 + $0x740] sm:$0xff]  ;;  %3687 = vst [vmem:[#allocation88_spill] sm:$0xff] %v3312_v46 }
  0xa0   :  { %2419 = vmatprep.subr.bf16.mxu0 %v3285_v62  ;;  %3685 = vst [vmem:[#allocation86_spill] sm:$0xff] %v3307_v44  ;;  %v3309_v52 = vpack.c.bf16 %v275_v20, %v274_v57  ;;  %v276_v62 = vld [vmem:[#allocation7 + $0x6d0] sm:$0xff]  ;;  %v261_v35 = vld [vmem:[#allocation7 + $0x658] sm:$0xff] }
  0xa1   :  { %2449 = vmatpush3.bf16.msra.mxu1 %v3283_v10  ;;  %v3303_v10 = vpack.c.bf16 %v257_v15, %v256_v53  ;;  %v308_v53 = vld [vmem:[#allocation7 + $0x7d0] sm:$0xff]  ;;  %v309_v15 = vld [vmem:[#allocation7 + $0x7d8] sm:$0xff] }
  0xa2   :  { %2451 = vmatprep.subr.bf16.mxu1 %v3288_v18  ;;  %3686 = vst [vmem:[#allocation87_spill] sm:$0xff] %v3309_v52  ;;  %v291_v18 = vld [vmem:[#allocation7 + $0x748] sm:$0xff]  ;;  %v292_v24 = vld [vmem:[#allocation7 + $0x750] sm:$0xff]  ;;  %v3324_v50 = vpack.c.bf16 %v309_v15, %v308_v53  ;;  %v294_v53 = vld [vmem:[#allocation7 + $0x760] sm:$0xff] }
  0xa3   :  { %2421 = vmatpush3.bf16.msra.mxu0 %v3291_v9  ;;  %3684 = vst [vmem:[#allocation85_spill] sm:$0xff] %v3303_v10  ;;  %v277_v9 = vld [vmem:[#allocation7 + $0x6d8] sm:$0xff]  ;;  %v3319_v57 = vpack.c.bf16 %v291_v18, %v290_v22  ;;  %v263_v22 = vld [vmem:[#allocation7 + $0x668] sm:$0xff] }
  0xa4   :  { %2423 = vmatprep.subr.bf16.mxu0 %v3297_v36  ;;  %v3321_v20 = vpack.c.bf16 %v277_v9, %v276_v62  ;;  %3691 = vst [vmem:[#allocation92_spill] sm:$0xff] %v3324_v50  ;;  %v278_v36 = vld [vmem:[#allocation7 + $0x6e0] sm:$0xff] }
  0xa5   :  { %2453 = vmatpush3.bf16.msra.mxu1 %v3295_v61  ;;  %v3315_v61 = vpack.c.bf16 %v259_v11, %v258_v40  ;;  %3689 = vst [vmem:[#allocation90_spill] sm:$0xff] %v3319_v57  ;;  %v310_v40 = vld [vmem:[#allocation7 + $0x7e0] sm:$0xff]  ;;  %v311_v11 = vld [vmem:[#allocation7 + $0x7e8] sm:$0xff] }
  0xa6   :  { %2455 = vmatprep.subr.bf16.mxu1 %v3300_v58  ;;  %3690 = vst [vmem:[#allocation91_spill] sm:$0xff] %v3321_v20  ;;  %v293_v58 = vld [vmem:[#allocation7 + $0x758] sm:$0xff]  ;;  %v262_v9 = vld [vmem:[#allocation7 + $0x660] sm:$0xff]  ;;  %v3336_v15 = vpack.c.bf16 %v311_v11, %v310_v40 }
  0xa7   :  { %2425 = vmatpush3.bf16.msra.mxu0 %v3303_v10  ;;  %3688 = vst [vmem:[#allocation89_spill] sm:$0xff] %v3315_v61  ;;  %v279_v10 = vld [vmem:[#allocation7 + $0x6e8] sm:$0xff]  ;;  %v3331_v18 = vpack.c.bf16 %v293_v58, %v292_v24  ;;  %v973_v58 = vld [vmem:[#allocation5] sm:$0xff]  ;;  %v264_v24 = vld [vmem:[#allocation7 + $0x670] sm:$0xff] }
  0xa8   :  { %2427 = vmatprep.subr.bf16.mxu0 %v3309_v52  ;;  %v3333_v62 = vpack.c.bf16 %v279_v10, %v278_v36  ;;  %v280_v52 = vld [vmem:[#allocation7 + $0x6f0] sm:$0xff]  ;;  %v265_v40 = vld [vmem:[#allocation7 + $0x678] sm:$0xff] }
  0xa9   :  { %2457 = vmatpush3.bf16.msra.mxu1 %v3307_v44  ;;  %v3327_v44 = vpack.c.bf16 %v261_v35, %v260_v42  ;;  %v312_v42 = vld [vmem:[#allocation7 + $0x7f0] sm:$0xff]  ;;  %v313_v35 = vld [vmem:[#allocation7 + $0x7f8] sm:$0xff] }
  0xaa   :  { %2459 = vmatprep.subr.bf16.mxu1 %v3312_v46  ;;  %v295_v46 = vld [vmem:[#allocation7 + $0x768] sm:$0xff]  ;;  %v3348_v11 = vpack.c.bf16 %v313_v35, %v312_v42  ;;  %v3724_v42 = vld [vmem:[#allocation46_spill] sm:$0xff] }
  0xab   :  { %2429 = vmatpush3.bf16.msra.mxu0 %v3315_v61  ;;  %3692 = vst [vmem:[#allocation93_spill] sm:$0xff] %v3327_v44  ;;  %v281_v61 = vld [vmem:[#allocation7 + $0x6f8] sm:$0xff]  ;;  %v3343_v10 = vpack.c.bf16 %v295_v46, %v294_v53  ;;  %v3725_v35 = vld [vmem:[#allocation47_spill] sm:$0xff] }
  0xac   :  { %2431 = vmatprep.subr.bf16.mxu0 %v3321_v20  ;;  %v3345_v36 = vpack.c.bf16 %v281_v61, %v280_v52  ;;  %v297_v20 = vld [vmem:[#allocation7 + $0x778] sm:$0xff]  ;;  %v988_v61 = vrot.slane %v973_v58, %v3000_v19 }
  0xad   :  { %2461 = vmatpush3.bf16.msra.mxu1 %v3319_v57  ;;  %v3339_v57 = vpack.c.bf16 %v263_v22, %v262_v9  ;;  %v3351_v9 = vpack.c.bf16 %v265_v40, %v264_v24  ;;  %v3727_v24 = vld [vmem:[#allocation49_spill] sm:$0xff]  ;;  %v3728_v40 = vld [vmem:[#allocation50_spill] sm:$0xff] }
  0xae   :  { %2463 = vmatprep.subr.bf16.mxu1 %v3324_v50  ;;  %v296_v50 = vld [vmem:[#allocation7 + $0x770] sm:$0xff]  ;;  %v996_v22 = vcombine.high %v988_v61, %v988_v61 }
  0xaf   :  { %2433 = vmatpush3.bf16.msra.mxu0 %v3327_v44  ;;  %v981_v44 = vcombine.high %v973_v58, %v973_v58  ;;  %v3355_v46 = vpack.c.bf16 %v297_v20, %v296_v50  ;;  %v3722_v20 = vld [vmem:[#allocation44_spill] sm:$0xff]  ;;  %v3723_v50 = vld [vmem:[#allocation45_spill] sm:$0xff] }
  0xb0   :  { %2435 = vmatprep.subr.bf16.mxu0 %v3333_v62  ;;  %v3726_v58 = vld [vmem:[#allocation48_spill] sm:$0xff] }
  0xb1   :  { %2465 = vmatpush3.bf16.msra.mxu1 %v3331_v18  ;;  %v995_v52 = vrot.slane %v981_v44, %v3000_v19  ;;  %v3721_v44 = vld [vmem:[#allocation43_spill] sm:$0xff] }
  0xb2   :  { %2467 = vmatprep.subr.bf16.mxu1 %v3336_v15 }
  0xb3   :  { %2437 = vmatpush3.bf16.msra.mxu0 %v3339_v57  ;;  %v997_v53 = vcombine.high %v995_v52, %v995_v52 }
  0xb4   :  { %2439 = vmatprep.subr.bf16.mxu0 %v3345_v36 }
  0xb5   :  { %2469 = vmatpush3.bf16.msra.mxu1 %v3343_v10 }
  0xb6   :  { %2471 = vmatprep.subr.bf16.mxu1 %v3348_v11 }
  0xb7   :  { %2441 = vmatpush3.bf16.msra.mxu0 %v3351_v9 }
  0xb8   :  { %2475 = vmatprep.subr.bf16.mxu0 %v2938_v3  ;;  %v974_v3 = vld [vmem:[#allocation5 + $0x8] sm:$0xff] }
  0xb9   :  { %2473 = vmatpush3.bf16.msra.mxu1 %v3355_v46 }
  0xba   :  { %2507 = vmatprep.subr.bf16.mxu1 %v2942_v8  ;;  %898 = vmatmul.mubr.f32.vlgmr.msra.gmra.mrb[6].mxu0 %v3255_v37  ;;  %v1005_v8 = vrot.slane %v974_v3, %v3000_v19 }
  0xbb   :  { %2477 = vmatpush3.bf16.msra.mxu0 %v2940_v7  ;;  %1129 = vmatprep.mubr.f32.mxu0 %v996_v22  ;;  %v998_v7 = vcombine.high %v974_v3, %v974_v3  ;;  %v3731_v22 = vld [vmem:[#allocation53_spill] sm:$0xff]  ;;  %v3733_v3 = vld [vmem:[#allocation55_spill] sm:$0xff] }
  0xbc   :  { %968 = vmatmul.mubr.f32.vlgmr.msra.gmra.mrb[6].mxu1 %v3258_v60  ;;  %2479 = vmatprep.subr.bf16.mxu0 %v2949_v16  ;;  %v1013_v16 = vcombine.high %v1005_v8, %v1005_v8 }
  0xbd   :  { %2509 = vmatpush3.bf16.msra.mxu1 %v2945_v12  ;;  %1199 = vmatprep.mubr.f32.mxu1 %v997_v53  ;;  %v1012_v12 = vrot.slane %v998_v7, %v3000_v19  ;;  %v3732_v53 = vld [vmem:[#allocation54_spill] sm:$0xff]  ;;  %v3734_v7 = vld [vmem:[#allocation56_spill] sm:$0xff] }
  0xbe   :  { %2511 = vmatprep.subr.bf16.mxu1 %v2954_v21  ;;  %v3693_v21 = vld [vmem:[#allocation15_spill] sm:$0xff] }
  0xbf   :  { %2481 = vmatpush3.bf16.msra.mxu0 %v2951_v17  ;;  %v1014_v17 = vcombine.high %v1012_v12, %v1012_v12 }
  0xc0   :  { %2483 = vmatprep.subr.bf16.mxu0 %v2959_v26  ;;  %v3695_v26 = vld [vmem:[#allocation17_spill] sm:$0xff] }
  0xc1   :  { %2513 = vmatpush3.bf16.msra.mxu1 %v2957_v25  ;;  %v3694_v25 = vld [vmem:[#allocation16_spill] sm:$0xff] }
  0xc2   :  { %2515 = vmatprep.subr.bf16.mxu1 %v2965_v34  ;;  %v3697_v34 = vld [vmem:[#allocation19_spill] sm:$0xff] }
  0xc3   :  { %2485 = vmatpush3.bf16.msra.mxu0 %v2963_v33  ;;  %v3696_v33 = vld [vmem:[#allocation18_spill] sm:$0xff] }
  0xc4   :  { %2487 = vmatprep.subr.bf16.mxu0 %v2971_v39  ;;  %v3699_v39 = vld [vmem:[#allocation21_spill] sm:$0xff] }
  0xc5   :  { %2517 = vmatpush3.bf16.msra.mxu1 %v2969_v38  ;;  %v3698_v38 = vld [vmem:[#allocation20_spill] sm:$0xff] }
  0xc6   :  { %2519 = vmatprep.subr.bf16.mxu1 %v2974_v43  ;;  %v3700_v43 = vld [vmem:[#allocation22_spill] sm:$0xff] }
  0xc7   :  { %2489 = vmatpush3.bf16.msra.mxu0 %v2977_v51  ;;  %v3701_v51 = vld [vmem:[#allocation23_spill] sm:$0xff] }
  0xc8   :  { %2491 = vmatprep.subr.bf16.mxu0 %v2983_v55  ;;  %v3703_v55 = vld [vmem:[#allocation25_spill] sm:$0xff] }
  0xc9   :  { %2521 = vmatpush3.bf16.msra.mxu1 %v2981_v54  ;;  %v3702_v54 = vld [vmem:[#allocation24_spill] sm:$0xff] }
  0xca   :  { %2523 = vmatprep.subr.bf16.mxu1 %v2986_v59  ;;  %v3704_v59 = vld [vmem:[#allocation26_spill] sm:$0xff] }
  0xcb   :  { %2493 = vmatpush3.bf16.msra.mxu0 %v2989_v4  ;;  %v3705_v4 = vld [vmem:[#allocation27_spill] sm:$0xff] }
  0xcc   :  { %2495 = vmatprep.subr.bf16.mxu0 %v2995_v6  ;;  %v3707_v6 = vld [vmem:[#allocation29_spill] sm:$0xff] }
  0xcd   :  { %2525 = vmatpush3.bf16.msra.mxu1 %v2993_v5  ;;  %v3706_v5 = vld [vmem:[#allocation28_spill] sm:$0xff] }
  0xce   :  { %2527 = vmatprep.subr.bf16.mxu1 %v2998_v13  ;;  %v3708_v13 = vld [vmem:[#allocation30_spill] sm:$0xff] }
  0xcf   :  { %2497 = vmatpush3.bf16.msra.mxu0 %v3003_v23  ;;  %v3709_v23 = vld [vmem:[#allocation31_spill] sm:$0xff] }
  0xd0   :  { %2499 = vmatprep.subr.bf16.mxu0 %v3009_v28  ;;  %v3710_v28 = vld [vmem:[#allocation32_spill] sm:$0xff] }
  0xd1   :  { %2529 = vmatpush3.bf16.msra.mxu1 %v3007_v27  ;;  %v975_v27 = vld [vmem:[#allocation5 + $0x10] sm:$0xff] }
  0xd2   :  { %2531 = vmatprep.subr.bf16.mxu1 %v3012_v32  ;;  %v3711_v32 = vld [vmem:[#allocation33_spill] sm:$0xff] }
  0xd3   :  { %2501 = vmatpush3.bf16.msra.mxu0 %v3016_v45  ;;  %v3712_v45 = vld [vmem:[#allocation34_spill] sm:$0xff] }
  0xd4   :  { %2503 = vmatprep.subr.bf16.mxu0 %v3023_v49  ;;  %v3713_v49 = vld [vmem:[#allocation35_spill] sm:$0xff] }
  0xd5   :  { %2533 = vmatpush3.bf16.msra.mxu1 %v3021_v48  ;;  %v1015_v48 = vcombine.high %v975_v27, %v975_v27 }
  0xd6   :  { %2535 = vmatprep.subr.bf16.mxu1 %v3026_v56  ;;  %v3714_v56 = vld [vmem:[#allocation36_spill] sm:$0xff] }
  0xd7   :  { %2505 = vmatpush3.bf16.msra.mxu0 %v3029_v0  ;;  %v3715_v0 = vld [vmem:[#allocation37_spill] sm:$0xff] }
  0xd8   :  { %2539 = vmatprep.subr.bf16.mxu0 %v3035_v2  ;;  %v1022_v2 = vrot.slane %v975_v27, %v3000_v19  ;;  %v3752_v27 = vld [vmem:[#allocation74_spill] sm:$0xff] }
  0xd9   :  { %2537 = vmatpush3.bf16.msra.mxu1 %v3033_v1  ;;  %v3716_v1 = vld [vmem:[#allocation38_spill] sm:$0xff] }
  0xda   :  { %2571 = vmatprep.subr.bf16.mxu1 %v3038_v14  ;;  %1130 = vmatmul.mubr.f32.vlgmr.msra.gmra.mrb[8].mxu0 %v988_v61  ;;  %v1029_v14 = vrot.slane %v1015_v48, %v3000_v19  ;;  %v1030_v37 = vcombine.high %v1022_v2, %v1022_v2  ;;  %v3729_v61 = vld [vmem:[#allocation51_spill] sm:$0xff]  ;;  %v3754_v48 = vld [vmem:[#allocation76_spill] sm:$0xff] }
  0xdb   :  { %2541 = vmatpush3.bf16.msra.mxu0 %v3041_v29  ;;  %1269 = vmatprep.mubr.f32.mxu0 %v1013_v16  ;;  %v3717_v29 = vld [vmem:[#allocation39_spill] sm:$0xff] }
  0xdc   :  { %1200 = vmatmul.mubr.f32.vlgmr.msra.gmra.mrb[8].mxu1 %v995_v52  ;;  %2543 = vmatprep.subr.bf16.mxu0 %v3047_v31  ;;  %v3719_v31 = vld [vmem:[#allocation41_spill] sm:$0xff]  ;;  %v1031_v60 = vcombine.high %v1029_v14, %v1029_v14  ;;  %v3730_v52 = vld [vmem:[#allocation52_spill] sm:$0xff]  ;;  %v3737_v16 = vld [vmem:[#allocation59_spill] sm:$0xff] }
  0xdd   :  { %2573 = vmatpush3.bf16.msra.mxu1 %v3045_v30  ;;  %1339 = vmatprep.mubr.f32.mxu1 %v1014_v17  ;;  %v3718_v30 = vld [vmem:[#allocation40_spill] sm:$0xff] }
  0xde   :  { %2575 = vmatprep.subr.bf16.mxu1 %v3050_v41  ;;  %v3720_v41 = vld [vmem:[#allocation42_spill] sm:$0xff]  ;;  %v3738_v17 = vld [vmem:[#allocation60_spill] sm:$0xff] }
  0xdf   :  { %2545 = vmatpush3.bf16.msra.mxu0 %v3693_v21  ;;  %v3739_v21 = vld [vmem:[#allocation61_spill] sm:$0xff] }
  0xe0   :  { %2547 = vmatprep.subr.bf16.mxu0 %v3695_v26  ;;  %v3741_v26 = vld [vmem:[#allocation63_spill] sm:$0xff] }
  0xe1   :  { %2577 = vmatpush3.bf16.msra.mxu1 %v3694_v25  ;;  %v3740_v25 = vld [vmem:[#allocation62_spill] sm:$0xff] }
  0xe2   :  { %2579 = vmatprep.subr.bf16.mxu1 %v3696_v33  ;;  %v976_v33 = vld [vmem:[#allocation5 + $0x18] sm:$0xff] }
  0xe3   :  { %2549 = vmatpush3.bf16.msra.mxu0 %v3697_v34  ;;  %v3742_v34 = vld [vmem:[#allocation64_spill] sm:$0xff] }
  0xe4   :  { %2551 = vmatprep.subr.bf16.mxu0 %v3699_v39  ;;  %v3744_v39 = vld [vmem:[#allocation66_spill] sm:$0xff] }
  0xe5   :  { %2581 = vmatpush3.bf16.msra.mxu1 %v3698_v38  ;;  %v3743_v38 = vld [vmem:[#allocation65_spill] sm:$0xff] }
  0xe6   :  { %2583 = vmatprep.subr.bf16.mxu1 %v3700_v43  ;;  %v1032_v43 = vcombine.high %v976_v33, %v976_v33 }
  0xe7   :  { %2553 = vmatpush3.bf16.msra.mxu0 %v3701_v51  ;;  %v3745_v51 = vld [vmem:[#allocation67_spill] sm:$0xff] }
  0xe8   :  { %2555 = vmatprep.subr.bf16.mxu0 %v3703_v55  ;;  %v3747_v55 = vld [vmem:[#allocation69_spill] sm:$0xff] }
  0xe9   :  { %2585 = vmatpush3.bf16.msra.mxu1 %v3702_v54  ;;  %v3746_v54 = vld [vmem:[#allocation68_spill] sm:$0xff] }
  0xea   :  { %2587 = vmatprep.subr.bf16.mxu1 %v3704_v59  ;;  %v3748_v59 = vld [vmem:[#allocation70_spill] sm:$0xff] }
  0xeb   :  { %2557 = vmatpush3.bf16.msra.mxu0 %v3705_v4  ;;  %v1039_v4 = vrot.slane %v976_v33, %v3000_v19 }
  0xec   :  { %2559 = vmatprep.subr.bf16.mxu0 %v3707_v6  ;;  %v3749_v6 = vld [vmem:[#allocation71_spill] sm:$0xff] }
  0xed   :  { %2589 = vmatpush3.bf16.msra.mxu1 %v3706_v5  ;;  %v1046_v5 = vrot.slane %v1032_v43, %v3000_v19  ;;  %v3755_v19 = vld [vmem:[#allocation77_spill] sm:$0xff] }
  0xee   :  { %2591 = vmatprep.subr.bf16.mxu1 %v3708_v13  ;;  %v3750_v13 = vld [vmem:[#allocation72_spill] sm:$0xff] }
  0xef   :  { %2561 = vmatpush3.bf16.msra.mxu0 %v3709_v23  ;;  %v3751_v23 = vld [vmem:[#allocation73_spill] sm:$0xff] }
  0xf0   :  { %2563 = vmatprep.subr.bf16.mxu0 %v3711_v32  ;;  %v1048_v32 = vcombine.high %v1046_v5, %v1046_v5 }
  0xf1   :  { %2593 = vmatpush3.bf16.msra.mxu1 %v3710_v28  ;;  %v1047_v28 = vcombine.high %v1039_v4, %v1039_v4 }
  0xf2   :  { %2595 = vmatprep.subr.bf16.mxu1 %v3712_v45  ;;  %v3753_v45 = vld [vmem:[#allocation75_spill] sm:$0xff] }
  0xf3   :  { %2565 = vmatpush3.bf16.msra.mxu0 %v3713_v49  ;;  %v3756_v49 = vld [vmem:[#allocation78_spill] sm:$0xff] }
  0xf4   :  { %2567 = vmatprep.subr.bf16.mxu0 %v3715_v0  ;;  %v3758_v0 = vld [vmem:[#allocation80_spill] sm:$0xff] }
  0xf5   :  { %2597 = vmatpush3.bf16.msra.mxu1 %v3714_v56  ;;  %v3757_v56 = vld [vmem:[#allocation79_spill] sm:$0xff] }
  0xf6   :  { %2599 = vmatprep.subr.bf16.mxu1 %v3716_v1  ;;  %v3759_v1 = vld [vmem:[#allocation81_spill] sm:$0xff] }
  0xf7   :  { %2569 = vmatpush3.bf16.msra.mxu0 %v3717_v29  ;;  %v3764_v29 = vld [vmem:[#allocation86_spill] sm:$0xff] }
  0xf8   :  { %2603 = vmatprep.subr.bf16.mxu0 %v3719_v31  ;;  %v3766_v31 = vld [vmem:[#allocation88_spill] sm:$0xff] }
  0xf9   :  { %2601 = vmatpush3.bf16.msra.mxu1 %v3718_v30  ;;  %v3765_v30 = vld [vmem:[#allocation87_spill] sm:$0xff] }
  0xfa   :  { %2635 = vmatprep.subr.bf16.mxu1 %v3720_v41  ;;  %1270 = vmatmul.mubr.f32.vlgmr.msra.gmra.mrb[10].mxu0 %v1005_v8  ;;  %v3735_v8 = vld [vmem:[#allocation57_spill] sm:$0xff] }
  0xfb   :  { %2605 = vmatpush3.bf16.msra.mxu0 %v3721_v44  ;;  %1409 = vmatprep.mubr.f32.mxu0 %v1030_v37  ;;  %v3767_v41 = vld [vmem:[#allocation89_spill] sm:$0xff]  ;;  %v3768_v37 = vld [vmem:[#allocation90_spill] sm:$0xff] }
  0xfc   :  { %1340 = vmatmul.mubr.f32.vlgmr.msra.gmra.mrb[10].mxu1 %v1012_v12  ;;  %2607 = vmatprep.subr.bf16.mxu0 %v3723_v50  ;;  %v3736_v12 = vld [vmem:[#allocation58_spill] sm:$0xff] }
  0xfd   :  { %2637 = vmatpush3.bf16.msra.mxu1 %v3722_v20  ;;  %1479 = vmatprep.mubr.f32.mxu1 %v1031_v60  ;;  %v3769_v60 = vld [vmem:[#allocation91_spill] sm:$0xff]  ;;  %v3770_v20 = vld [vmem:[#allocation92_spill] sm:$0xff]  ;;  %v3491_v50 = vld [vmem:[%s3532_s3] ss:$0 sm:$0xff]  ;;  %s2870_s3 = smov [#allocation8]  }
  0xfe   :  { %2639 = vmatprep.subr.bf16.mxu1 %v3724_v42  ;;  %s1633_s30 = sshll.u32 %s2870_s3, 4  ;;  %s1634_s30 = int_to_ptr.vmem [resolvable:$true] %s1633_s30 }
  0xff   :  { %2609 = vmatpush3.bf16.msra.mxu0 %v3725_v35  ;;  %s2812_s6 = scalar_lea.vmem %s1634_s30, 32  ;;  %p2817_p11 = scmp.lt.s32.totalorder %s1634_s30, %s1634_s30 }
 0x100   :  { %2611 = vmatprep.subr.bf16.mxu0 %v3727_v24  ;;  %v3771_v24 = vld [vmem:[#allocation93_spill] sm:$0xff]  ;;  %p2813_p10 = scmp.ne.s32.totalorder %s1634_s30, %s2812_s6  ;;  %p2818_p12 = scmp.lt.s32.totalorder %s2812_s6, %s2812_s6 }
 0x101   :  { %2641 = vmatpush3.bf16.msra.mxu1 %v3726_v58 }
 0x102   :  { %2643 = vmatprep.subr.bf16.mxu1 %v3728_v40  ;;  %p2819_p13 = por %p2818_p12, %p2817_p11 }
 0x103   :  { %2613 = vmatpush3.bf16.msra.mxu0 %v3729_v61 }
 0x104   :  { %2615 = vmatprep.subr.bf16.mxu0 %v3731_v22  ;;  %p2820_p0 = pnand %p2819_p13, %p2813_p10 }
 0x105   :  { %2645 = vmatpush3.bf16.msra.mxu1 %v3730_v52 }
 0x106   :  { %2647 = vmatprep.subr.bf16.mxu1 %v3732_v53 }
 0x107   :  { %2617 = vmatpush3.bf16.msra.mxu0 %v3733_v3 }
 0x108   :  { %2619 = vmatprep.subr.bf16.mxu0 %v3735_v8 }
 0x109   :  { %2649 = vmatpush3.bf16.msra.mxu1 %v3734_v7 }
 0x10a   :  { %2651 = vmatprep.subr.bf16.mxu1 %v3736_v12 }
 0x10b   :  { %2621 = vmatpush3.bf16.msra.mxu0 %v3737_v16 }
 0x10c   :  { %2623 = vmatprep.subr.bf16.mxu0 %v3739_v21 }
 0x10d   :  { %2653 = vmatpush3.bf16.msra.mxu1 %v3738_v17 }
 0x10e   :  { %2655 = vmatprep.subr.bf16.mxu1 %v3740_v25 }
 0x10f   :  { %2625 = vmatpush3.bf16.msra.mxu0 %v3741_v26 }
 0x110   :  { %2627 = vmatprep.subr.bf16.mxu0 %v3743_v38 }
 0x111   :  { %2657 = vmatpush3.bf16.msra.mxu1 %v3742_v34 }
 0x112   :  { %2659 = vmatprep.subr.bf16.mxu1 %v3744_v39 }
 0x113   :  { %2629 = vmatpush3.bf16.msra.mxu0 %v3745_v51 }
 0x114   :  { %2631 = vmatprep.subr.bf16.mxu0 %v3747_v55 }
 0x115   :  { %2661 = vmatpush3.bf16.msra.mxu1 %v3746_v54 }
 0x116   :  { %2663 = vmatprep.subr.bf16.mxu1 %v3748_v59 }
 0x117   :  { %2633 = vmatpush3.bf16.msra.mxu0 %v3749_v6 }
 0x118   :  { %2667 = vmatprep.subr.bf16.mxu0 %v3751_v23 }
 0x119   :  { %2665 = vmatpush3.bf16.msra.mxu1 %v3750_v13 }
 0x11a   :  { %2699 = vmatprep.subr.bf16.mxu1 %v3752_v27  ;;  %1410 = vmatmul.mubr.f32.vlgmr.msra.gmra.mrb[12].mxu0 %v1022_v2  ;;  %v3760_v2 = vld [vmem:[#allocation82_spill] sm:$0xff] }
 0x11b   :  { %2669 = vmatpush3.bf16.msra.mxu0 %v3753_v45  ;;  %1549 = vmatprep.mubr.f32.mxu0 %v1047_v28 }
 0x11c   :  { %1480 = vmatmul.mubr.f32.vlgmr.msra.gmra.mrb[12].mxu1 %v1029_v14  ;;  %2671 = vmatprep.subr.bf16.mxu0 %v3267_v47  ;;  %v3761_v14 = vld [vmem:[#allocation83_spill] sm:$0xff]  ;;  %v3763_v47 = vld [vmem:[#allocation85_spill] sm:$0xff] }
 0x11d   :  { %2701 = vmatpush3.bf16.msra.mxu1 %v3265_v63  ;;  %1619 = vmatprep.mubr.f32.mxu1 %v1048_v32  ;;  %v3762_v63 = vld [vmem:[#allocation84_spill] sm:$0xff] }
 0x11e   :  { %2703 = vmatprep.subr.bf16.mxu1 %v3754_v48 }
 0x11f   :  { %2673 = vmatpush3.bf16.msra.mxu0 %v3755_v19 }
 0x120   :  { %2675 = vmatprep.subr.bf16.mxu0 %v3757_v56 }
 0x121   :  { %2705 = vmatpush3.bf16.msra.mxu1 %v3756_v49 }
 0x122   :  { %2707 = vmatprep.subr.bf16.mxu1 %v3758_v0 }
 0x123   :  { %2677 = vmatpush3.bf16.msra.mxu0 %v3759_v1 }
 0x124   :  { %2679 = vmatprep.subr.bf16.mxu0 %v3761_v14 }
 0x125   :  { %2709 = vmatpush3.bf16.msra.mxu1 %v3760_v2 }
 0x126   :  { %2711 = vmatprep.subr.bf16.mxu1 %v3762_v63 }
 0x127   :  { %2681 = vmatpush3.bf16.msra.mxu0 %v3763_v47 }
 0x128   :  { %2683 = vmatprep.subr.bf16.mxu0 %v3765_v30 }
 0x129   :  { %2713 = vmatpush3.bf16.msra.mxu1 %v3764_v29 }
 0x12a   :  { %2715 = vmatprep.subr.bf16.mxu1 %v3766_v31 }
 0x12b   :  { %2685 = vmatpush3.bf16.msra.mxu0 %v3767_v41 }
 0x12c   :  { %2687 = vmatprep.subr.bf16.mxu0 %v3769_v60 }
 0x12d   :  { %2717 = vmatpush3.bf16.msra.mxu1 %v3768_v37  ;;  %v1690_v44 = vpop.f32.mrb[0].mxu0 }
 0x12e   :  { %2719 = vmatprep.subr.bf16.mxu1 %v3770_v20  ;;  %v1691_v42 = vpop.f32.mrb[1].mxu0 }
 0x12f   :  { %v1725_v35 = vpop.f32.mrb[0].mxu1  ;;  %v1692_v58 = vadd.f32 %v1691_v42, %v1690_v44  ;;  %2689 = vmatpush3.bf16.msra.mxu0 %v3771_v24 }
 0x130   :  { %v1726_v40 = vpop.f32.mrb[1].mxu1  ;;  %2691 = vmatprep.subr.bf16.mxu0 %v3333_v62 }
 0x131   :  { %v1727_v61 = vadd.f32 %v1726_v40, %v1725_v35  ;;  %2721 = vmatpush3.bf16.msra.mxu1 %v3331_v18  ;;  %v480_v52 = vadd.f32 %v1692_v58, %v3491_v50 }
 0x132   :  { %2723 = vmatprep.subr.bf16.mxu1 %v3336_v15 }
 0x133   :  { %v550_v22 = vadd.f32 %v1727_v61, %v480_v52  ;;  %2693 = vmatpush3.bf16.msra.mxu0 %v3339_v57 }
 0x134   :  { %2695 = vmatprep.subr.bf16.mxu0 %v3345_v36 }
 0x135   :  { %2725 = vmatpush3.bf16.msra.mxu1 %v3343_v10 }
 0x136   :  { %2727 = vmatprep.subr.bf16.mxu1 %v3348_v11 }
 0x137   :  { %2697 = vmatpush3.bf16.msra.mxu0 %v3351_v9 }
 0x139   :  { %2729 = vmatpush3.bf16.msra.mxu1 %v3355_v46 }
 0x13a   :  { %1550 = vmatmul.mubr.f32.vlgmr.msra.gmra.mrb[14].mxu0 %v1039_v4 }
 0x13c   :  { %1620 = vmatmul.mubr.f32.vlgmr.msra.gmra.mrb[14].mxu1 %v1046_v5 }
 0x14d   :  { %v1760_v18 = vpop.f32.mrb[2].mxu0 }
 0x14e   :  { %v1761_v62 = vpop.f32.mrb[3].mxu0 }
 0x14f   :  { %v1795_v53 = vpop.f32.mrb[2].mxu1  ;;  %v1762_v3 = vadd.f32 %v1761_v62, %v1760_v18 }
 0x150   :  { %v1796_v15 = vpop.f32.mrb[3].mxu1 }
 0x151   :  { %v1797_v7 = vadd.f32 %v1796_v15, %v1795_v53  ;;  %v620_v8 = vadd.f32 %v1762_v3, %v550_v22 }
 0x153   :  { %v690_v57 = vadd.f32 %v1797_v7, %v620_v8 }
 0x16d   :  { %v1830_v12 = vpop.f32.mrb[4].mxu0 }
 0x16e   :  { %v1831_v10 = vpop.f32.mrb[5].mxu0 }
 0x16f   :  { %v1865_v16 = vpop.f32.mrb[4].mxu1  ;;  %v1832_v36 = vadd.f32 %v1831_v10, %v1830_v12 }
 0x170   :  { %v1866_v17 = vpop.f32.mrb[5].mxu1 }
 0x171   :  { %v1867_v11 = vadd.f32 %v1866_v17, %v1865_v16  ;;  %v760_v21 = vadd.f32 %v1832_v36, %v690_v57 }
 0x173   :  { %v830_v9 = vadd.f32 %v1867_v11, %v760_v21 }
 0x18d   :  { %v1900_v25 = vpop.f32.mrb[6].mxu0 }
 0x18e   :  { %v1901_v46 = vpop.f32.mrb[7].mxu0 }
 0x18f   :  { %v1935_v26 = vpop.f32.mrb[6].mxu1  ;;  %v1902_v33 = vadd.f32 %v1901_v46, %v1900_v25 }
 0x190   :  { %v1936_v34 = vpop.f32.mrb[7].mxu1 }
 0x191   :  { %v1937_v38 = vadd.f32 %v1936_v34, %v1935_v26  ;;  %v900_v39 = vadd.f32 %v1902_v33, %v830_v9 }
 0x193   :  { %v970_v43 = vadd.f32 %v1937_v38, %v900_v39 }
 0x195   :  { %1625 = vst [vmem:[#allocation8] sm:$0x3] %v970_v43 }
 0x196   :  { %2823 = shalt.err (!%p2820_p0)
}
 0x197   :  { %s2824_s9 = scalar_lea.hbm %s3533_s4, 32 }
 0x198   :  { %p2825_p1 = scmp.ne.s32.totalorder %s3533_s4, %s2824_s9  ;;  %p2828_p2 = scmp.lt.u32.totalorder %s2824_s9, %s3533_s4 }
 0x19a   :  { %p2830_p3 = pnand %p2828_p2, %p2825_p1 }
 0x19c   :  { %2833 = shalt.err (!%p2830_p3)
}
 0x19d   :  { %1636 = dma.vmem_to_hbm [thread:$0]  %s1634_s30, 32, %s3533_s4, [#allocation4]  }
 0x19e   :  { %s2871_s4 = smov [#allocation9]  }
 0x19f   :  { %s1643_s15 = sshll.u32 %s2871_s4, 4  ;;  %s1644_s15 = int_to_ptr.vmem [resolvable:$true] %s1643_s15 }
 0x1a0   :  { %s2834_s16 = scalar_lea.vmem %s1644_s15, 32  ;;  %p2839_p5 = scmp.lt.s32.totalorder %s1644_s15, %s1644_s15 }
 0x1a1   :  { %p2835_p4 = scmp.ne.s32.totalorder %s1644_s15, %s2834_s16  ;;  %p2840_p6 = scmp.lt.s32.totalorder %s2834_s16, %s2834_s16 }
 0x1a3   :  { %p2841_p7 = por %p2840_p6, %p2839_p5 }
 0x1a5   :  { %p2842_p8 = pnand %p2841_p7, %p2835_p4 }
 0x1ad   :  { %v1970_v51 = vpop.f32.mrb[8].mxu0 }
 0x1ae   :  { %v1971_v54 = vpop.f32.mrb[9].mxu0 }
 0x1af   :  { %v2005_v55 = vpop.f32.mrb[8].mxu1  ;;  %v1972_v59 = vadd.f32 %v1971_v54, %v1970_v51 }
 0x1b0   :  { %v2006_v4 = vpop.f32.mrb[9].mxu1 }
 0x1b1   :  { %v2007_v5 = vadd.f32 %v2006_v4, %v2005_v55  ;;  %v1132_v6 = vadd.f32 %v1972_v59, %v3491_v50 }
 0x1b3   :  { %v1202_v13 = vadd.f32 %v2007_v5, %v1132_v6 }
 0x1cd   :  { %v2040_v23 = vpop.f32.mrb[10].mxu0 }
 0x1ce   :  { %v2041_v27 = vpop.f32.mrb[11].mxu0 }
 0x1cf   :  { %v2075_v28 = vpop.f32.mrb[10].mxu1  ;;  %v2042_v32 = vadd.f32 %v2041_v27, %v2040_v23 }
 0x1d0   :  { %v2076_v45 = vpop.f32.mrb[11].mxu1 }
 0x1d1   :  { %v2077_v48 = vadd.f32 %v2076_v45, %v2075_v28  ;;  %v1272_v19 = vadd.f32 %v2042_v32, %v1202_v13 }
 0x1d3   :  { %v1342_v49 = vadd.f32 %v2077_v48, %v1272_v19 }
 0x1ed   :  { %v2110_v56 = vpop.f32.mrb[12].mxu0 }
 0x1ee   :  { %v2111_v0 = vpop.f32.mrb[13].mxu0 }
 0x1ef   :  { %v2145_v1 = vpop.f32.mrb[12].mxu1  ;;  %v2112_v2 = vadd.f32 %v2111_v0, %v2110_v56 }
 0x1f0   :  { %v2146_v14 = vpop.f32.mrb[13].mxu1 }
 0x1f1   :  { %v2147_v63 = vadd.f32 %v2146_v14, %v2145_v1  ;;  %v1412_v47 = vadd.f32 %v2112_v2, %v1342_v49 }
 0x1f3   :  { %v1482_v29 = vadd.f32 %v2147_v63, %v1412_v47 }
 0x20d   :  { %v2180_v30 = vpop.f32.mrb[14].mxu0 }
 0x20e   :  { %v2181_v31 = vpop.f32.mrb[15].mxu0 }
 0x20f   :  { %v2215_v41 = vpop.f32.mrb[14].mxu1  ;;  %v2182_v37 = vadd.f32 %v2181_v31, %v2180_v30 }
 0x210   :  { %v2216_v60 = vpop.f32.mrb[15].mxu1 }
 0x211   :  { %v2217_v44 = vadd.f32 %v2216_v60, %v2215_v41  ;;  %v1552_v20 = vadd.f32 %v2182_v37, %v1482_v29 }
 0x213   :  { %v1622_v50 = vadd.f32 %v2217_v44, %v1552_v20 }
 0x215   :  { %1626 = vst [vmem:[#allocation9] sm:$0x3] %v1622_v50 }
 0x216   :  { %2845 = shalt.err (!%p2842_p8)
}
 0x217   :  { %s2846_s19 = scalar_lea.hbm %s3534_s5, 32 }
 0x218   :  { %p2847_p9 = scmp.ne.s32.totalorder %s3534_s5, %s2846_s19  ;;  %p2850_p10 = scmp.lt.u32.totalorder %s2846_s19, %s3534_s5 }
 0x21a   :  { %p2852_p11 = pnand %p2850_p10, %p2847_p9 }
 0x21c   :  { %2855 = shalt.err (!%p2852_p11)
}
 0x21d   :  { %1646 = dma.vmem_to_hbm [thread:$0]  %s1644_s15, 32, %s3534_s5, [#allocation10]  }
 0x21e   :  { %2860 = dma.done.wait [#allocation4], 32  }
 0x21f   :  { %2861 = vsyncadd [#allocation4], 4294967264 }
 0x220   :  { %2862 = dma.done.wait [#allocation10], 32  }
 0x221   :  { %2863 = vsyncadd [#allocation10], 4294967264 }
 0x222   :  { %1653 = vsyncpa [#allocation3], 1 }
 0x223   :  { %1654 = vsyncpa [#allocation6], 1 }
 0x224   :  { %1655 = vsyncpa [#allocation4], 1 }
 0x225   :  { %1656 = vsyncpa [#allocation10], 1 }

</bundles_post_ra>
